<compile_context>
chip_gen: v6e
topology: v6e:2x2x1
jax: 0.10.0
libtpu: 0.0.40
codegen_flags: <defaults>
</compile_context>

<pallas_src>
import functools

import jax
import jax.numpy as jnp
from jax.experimental import pallas as pl
from jax.experimental.pallas import tpu as pltpu


# --------------------------------------------------------------------------
# Pallas kernel: direct 3x3x3 conv as 27 shifted (Cout,Cin)@(Cin,HW) matmuls
# --------------------------------------------------------------------------
def _conv3d_kernel(*refs, hdim, wdim, apply_norm):
  """One (batch item, output depth slice) grid step of a 3x3x3 conv.

  Inputs (bf16):
    x0/x1/x2 : (1, 1, Cin_p, F)   padded depth slices d-1, d, d+1 in
               channels-major layout; F = (H+2)*W + 2 ((H padded by 1, the
               flattened (H+2)*W padded by 1 on each end so kx=+-1 taps stay
               in bounds).
    w        : (27, Cout, Cin_p)  tap-major weights, tap = kz*9 + ky*3 + kx.
    masks    : (2, HW)            {0,1} lane masks zeroing the W-boundary
               wrap of the kx=-1 / kx=+1 taps.
    b        : (Cout, 1) f32      bias          [only when apply_norm=False]
  Outputs (f32):
    y        : (1, 1, Cout, HW)   pre-norm conv output, lane-dense (HW lanes).
    stats    : (1, Cout, 2)       per-channel [sum, sum_sq], accumulated
               across the depth grid axis      [only when apply_norm=True]
  """
  if apply_norm:
    x0_ref, x1_ref, x2_ref, w_ref, msk_ref, y_ref, stats_ref = refs
  else:
    x0_ref, x1_ref, x2_ref, w_ref, msk_ref, b_ref, y_ref = refs

  hw = hdim * wdim
  msk = msk_ref[...]
  mask_m = msk[0:1, :]                     # zeros where x == 0      (kx = -1)
  mask_p = msk[1:2, :]                     # zeros where x == W - 1  (kx = +1)
  x_slices = (x0_ref[0, 0], x1_ref[0, 0], x2_ref[0, 0])   # (Cin_p, F) bf16

  cout = w_ref.shape[1]
  acc = jnp.zeros((cout, hw), jnp.float32)
  base = 1 + wdim
  tap = 0
  for kz in range(3):
    xz = x_slices[kz]
    for ky in range(3):
      for kx in range(3):
        start = base + (ky - 1) * wdim + (kx - 1)
        xs = xz[:, start:start + hw]                       # (Cin_p, HW) bf16
        if kx == 0:
          xs = xs * mask_m
        elif kx == 2:
          xs = xs * mask_p
        acc = acc + jnp.dot(w_ref[tap], xs,
                            preferred_element_type=jnp.float32)
        tap += 1

  if apply_norm:
    # InstanceNorm(affine=False) cancels the conv bias -> bias skipped.
    y_ref[0, 0] = acc
    dd = pl.program_id(1)

    @pl.when(dd == 0)
    def _init():
      stats_ref[...] = jnp.zeros_like(stats_ref)

    psum = jnp.sum(acc, axis=1, keepdims=True)             # (Cout, 1)
    psq = jnp.sum(acc * acc, axis=1, keepdims=True)        # (Cout, 1)
    stats_ref[0] = stats_ref[0] + jnp.concatenate([psum, psq], axis=1)
  else:
    y_ref[0, 0] = acc + b_ref[...]


# --------------------------------------------------------------------------
# Pallas wrapper
# --------------------------------------------------------------------------
def conv3d_block(x, params, *, apply_norm, apply_relu, eps=1e-5):
  """3x3x3 conv (stride 1, pad 1) [+ InstanceNorm3d + ReLU].

  x: (N, D, H, W, Cin) f32 -> (N, D, H, W, Cout) f32
  """
  n, d, h, w, cin = x.shape
  wt = params["w"]                                   # (27, Cout, Cin)
  bias = params["b"]                                 # (Cout,)
  cout = wt.shape[1]
  cin_p = max(8, ((cin + 7) // 8) * 8)               # sublane-pad channels
  hw = h * w
  f = (h + 2) * w + 2

  # ---- layout prep (plain JAX, fused by XLA): channels-major depth slices,
  #      pad D and H by 1, flatten (H+2, W), pad the flat ends, cast to bf16.
  xt = jnp.transpose(x, (0, 1, 4, 2, 3))             # (N, D, Cin, H, W)
  xt = jnp.pad(xt, ((0, 0), (1, 1), (0, cin_p - cin), (1, 1), (0, 0)))
  xt = xt.reshape(n, d + 2, cin_p, (h + 2) * w)
  xt = jnp.pad(xt, ((0, 0), (0, 0), (0, 0), (1, 1))).astype(jnp.bfloat16)

  wp = jnp.pad(wt, ((0, 0), (0, 0), (0, cin_p - cin))).astype(jnp.bfloat16)

  col = jnp.arange(hw, dtype=jnp.int32) % w
  masks = jnp.stack([col != 0, col != (w - 1)]).astype(jnp.bfloat16)  # (2,HW)

  kernel = functools.partial(_conv3d_kernel, hdim=h, wdim=w,
                             apply_norm=apply_norm)

  def x_spec(off):
    # Depth block size is 1, so the returned block index is an element index:
    # view the same padded array at depth offsets d, d+1, d+2 (the halo).
    return pl.BlockSpec((1, 1, cin_p, f),
                        lambda nn, dd, o=off: (nn, dd + o, 0, 0))

  in_specs = [
      x_spec(0), x_spec(1), x_spec(2),
      pl.BlockSpec((27, cout, cin_p), lambda nn, dd: (0, 0, 0)),
      pl.BlockSpec((2, hw), lambda nn, dd: (0, 0)),
  ]
  args = [xt, xt, xt, wp, masks]

  if apply_norm:
    out_shape = (jax.ShapeDtypeStruct((n, d, cout, hw), jnp.float32),
                 jax.ShapeDtypeStruct((n, cout, 2), jnp.float32))
    out_specs = (pl.BlockSpec((1, 1, cout, hw), lambda nn, dd: (nn, dd, 0, 0)),
                 pl.BlockSpec((1, cout, 2), lambda nn, dd: (nn, 0, 0)))
    semantics = ("parallel", "arbitrary")    # stats accumulate over depth
  else:
    in_specs.append(pl.BlockSpec((cout, 1), lambda nn, dd: (0, 0)))
    args.append(bias.reshape(cout, 1).astype(jnp.float32))
    out_shape = jax.ShapeDtypeStruct((n, d, cout, hw), jnp.float32)
    out_specs = pl.BlockSpec((1, 1, cout, hw), lambda nn, dd: (nn, dd, 0, 0))
    semantics = ("parallel", "parallel")

  res = pl.pallas_call(
      kernel,
      out_shape=out_shape,
      grid=(n, d),
      in_specs=in_specs,
      out_specs=out_specs,
      compiler_params=pltpu.CompilerParams(
          dimension_semantics=semantics,
          # Per-step working set (3 input slices + weights + one (Cout, HW)
          # output slice, double-buffered) is well under 1 MiB here, so it
          # fits every generation's scoped VMEM (incl. v7x's 64 MiB physical).
          vmem_limit_bytes=32 * 1024 * 1024),
  )(*args)

  if apply_norm:
    # Second lightweight pass: finalize InstanceNorm stats and apply
    # normalize (+ReLU) in plain JAX so XLA fuses it with the layout
    # transpose below (cheaper than another opaque Pallas HBM round trip).
    y, stats = res
    cnt = float(d * hw)
    mean = stats[:, :, 0] / cnt                              # (N, Cout)
    var = jnp.maximum(stats[:, :, 1] / cnt - mean * mean, 0.0)
    inv = jax.lax.rsqrt(var + eps)
    y = (y - mean[:, None, :, None]) * inv[:, None, :, None]
  else:
    y = res
  if apply_relu:
    y = jnp.maximum(y, 0.0)
  y = y.reshape(n, d, cout, h, w)
  return jnp.transpose(y, (0, 1, 3, 4, 2))                   # (N, D, H, W, C)


# --------------------------------------------------------------------------
# Plain-JAX glue (correlation, pooling, resize, grid-sample, cost volume)
# --------------------------------------------------------------------------
def match_corr(x_mov, x_fix, alpha):
  """MatchMambaBlock stand-in: alpha[0]-scaled elementwise correlation.

  Plain JAX on purpose: it is a trivial VPU op that XLA fuses into the
  following concat / conv layout prep; a dedicated Pallas call would only add
  an extra HBM round trip and launch overhead.
  """
  return alpha[0] * x_mov * x_fix, None


def match_corr_last(x_mov, x_fix, alpha, radius=1):
  """MatchMambaBlock_Last stand-in: local cost volume, (2r+1)^3 channels.

  TODO(synk): original block (1200 output channels at full scale) is
  undefined in the provided source; this 27-channel local correlation is a
  stand-in.
  """
  n, d, h, w, c = x_mov.shape
  pad = radius
  xf = jnp.pad(x_fix, ((0, 0), (pad, pad), (pad, pad), (pad, pad), (0, 0)))
  outs = []
  for dz in range(2 * radius + 1):
    for dy in range(2 * radius + 1):
      for dx in range(2 * radius + 1):
        shifted = xf[:, dz:dz + d, dy:dy + h, dx:dx + w, :]
        outs.append(jnp.mean(x_mov * shifted, axis=-1))
  corr = jnp.stack(outs, axis=-1) * alpha[0]
  return corr, None


def avg_pool3d_2x(x):
  n, d, h, w, c = x.shape
  x = x.reshape(n, d // 2, 2, h // 2, 2, w // 2, 2, c)
  return x.mean(axis=(2, 4, 6))


def _interp_axis(x, axis, out_size):
  in_size = x.shape[axis]
  pos = jnp.arange(out_size, dtype=jnp.float32) * (in_size - 1) / max(out_size - 1, 1)
  lo = jnp.floor(pos).astype(jnp.int32)
  hi = jnp.clip(lo + 1, 0, in_size - 1)
  frac = pos - lo.astype(jnp.float32)
  xlo = jnp.take(x, lo, axis=axis)
  xhi = jnp.take(x, hi, axis=axis)
  shape = [1] * x.ndim
  shape[axis] = out_size
  frac = frac.reshape(shape)
  return xlo * (1.0 - frac) + xhi * frac


def resize_flow_x2(flow):
  """ResizeTransformer_block(resize_factor=2, 'trilinear', align_corners=True)."""
  flow = 2.0 * flow
  n, d, h, w, c = flow.shape
  flow = _interp_axis(flow, 1, 2 * d)
  flow = _interp_axis(flow, 2, 2 * h)
  flow = _interp_axis(flow, 3, 2 * w)
  return flow


def spatial_transformer(src, flow):
  """Warp src by flow (voxel displacements along D,H,W), trilinear, zero pad.

  Matches SpatialTransformer_block with mode='bilinear' (trilinear on 5-D) and
  grid_sample(align_corners=True, padding_mode='zeros').
  src:  (N, D, H, W, C);  flow: (N, D, H, W, 3) with channel 0->D, 1->H, 2->W.
  """
  n, d, h, w, c = src.shape
  zz, yy, xx = jnp.meshgrid(jnp.arange(d, dtype=jnp.float32),
                            jnp.arange(h, dtype=jnp.float32),
                            jnp.arange(w, dtype=jnp.float32), indexing="ij")
  grid = jnp.stack([zz, yy, xx], axis=-1)[None]     # (1, D, H, W, 3)
  coords = grid + flow                              # voxel coordinates

  def sample_one(src_n, coords_n):
    z = coords_n[..., 0]
    y = coords_n[..., 1]
    x = coords_n[..., 2]
    z0 = jnp.floor(z)
    y0 = jnp.floor(y)
    x0 = jnp.floor(x)
    fz, fy, fx = z - z0, y - y0, x - x0
    src_flat = src_n.reshape(-1, c)
    out = jnp.zeros((d, h, w, c), jnp.float32)
    for dz in (0, 1):
      for dy in (0, 1):
        for dx in (0, 1):
          zc = z0 + dz
          yc = y0 + dy
          xc = x0 + dx
          wz = fz if dz == 1 else 1.0 - fz
          wy = fy if dy == 1 else 1.0 - fy
          wx = fx if dx == 1 else 1.0 - fx
          wgt = wz * wy * wx
          valid = ((zc >= 0) & (zc <= d - 1) &
                   (yc >= 0) & (yc <= h - 1) &
                   (xc >= 0) & (xc <= w - 1)).astype(jnp.float32)
          zi = jnp.clip(zc, 0, d - 1).astype(jnp.int32)
          yi = jnp.clip(yc, 0, h - 1).astype(jnp.int32)
          xi = jnp.clip(xc, 0, w - 1).astype(jnp.int32)
          idx = (zi * h + yi) * w + xi
          vals = jnp.take(src_flat, idx.reshape(-1), axis=0).reshape(d, h, w, c)
          out = out + (wgt * valid)[..., None] * vals
    return out

  return jax.vmap(sample_one)(src, coords)


# --------------------------------------------------------------------------
# Parameters (deterministic init)
# --------------------------------------------------------------------------
def init_params(key, cn=4, k_corr=27):
  keys = list(jax.random.split(key, 32))
  it = iter(keys)

  def conv_p(cin, cout, scale=0.05):
    # Weight layout: (27, Cout, Cin), tap = kz*9 + ky*3 + kx (cross-corr).
    w = jax.random.normal(next(it), (27, cout, cin), jnp.float32) * scale
    b = jnp.zeros((cout,), jnp.float32)
    return {"w": w, "b": b}

  p = {}
  # Encoder (conv_1 is Conv3DReLUBlock; conv_2..5 are FeatMambaBlock stand-ins)
  p["enc1"] = conv_p(1, cn)
  p["enc2"] = conv_p(cn, 2 * cn)
  p["enc3"] = conv_p(2 * cn, 4 * cn)
  p["enc4"] = conv_p(4 * cn, 8 * cn)
  p["enc5"] = conv_p(8 * cn, 16 * cn)
  # Decoder fusion convs
  p["conv1"] = conv_p(2 * cn, cn)
  p["conv2"] = conv_p(2 * cn * 3, 2 * cn)
  p["conv3"] = conv_p(4 * cn * 3, 4 * cn)
  p["conv4"] = conv_p(8 * cn * 3, 8 * cn)
  p["conv5"] = conv_p(16 * cn * 2 + k_corr, 16 * cn)
  # Registration heads (weights ~ Normal(0, 1e-5), bias 0)
  p["rh1"] = conv_p(cn, 3, 1e-5)
  p["rh2"] = conv_p(2 * cn, 3, 1e-5)
  p["rh3"] = conv_p(4 * cn, 3, 1e-5)
  p["rh4"] = conv_p(8 * cn, 3, 1e-5)
  p["rh5"] = conv_p(16 * cn, 3, 1e-5)
  # learnable post vector (passed to correlation blocks as alpha)
  p["post"] = jnp.array([5.0, 1.0, 1.0, 5.0, 1.0, 1.0], jnp.float32)
  return p


# --------------------------------------------------------------------------
# RegMamba forward
# --------------------------------------------------------------------------
def encoder_forward(params, x_in):
  # conv_1: Conv3DReLUBlock
  x_1 = conv3d_block(x_in, params["enc1"], apply_norm=True, apply_relu=True)
  x = avg_pool3d_2x(x_1)
  # TODO(synk): FeatMambaBlock undefined; using Conv3DReLUBlock stand-in.
  x_2 = conv3d_block(x, params["enc2"], apply_norm=True, apply_relu=True)
  x = avg_pool3d_2x(x_2)
  x_3 = conv3d_block(x, params["enc3"], apply_norm=True, apply_relu=True)
  x = avg_pool3d_2x(x_3)
  x_4 = conv3d_block(x, params["enc4"], apply_norm=True, apply_relu=True)
  x = avg_pool3d_2x(x_4)
  x_5 = conv3d_block(x, params["enc5"], apply_norm=True, apply_relu=True)
  return x_1, x_2, x_3, x_4, x_5


def regmamba_forward(params, moving, fixed):
  post = params["post"]
  n = moving.shape[0]

  # Run both encoder towers as one batched call (batch axis = 2*N) so the
  # Pallas grid has >=2 parallel batch rows (both TensorCores busy on v7x)
  # and the kernel-launch count is halved everywhere.
  both = jnp.concatenate([moving, fixed], axis=0)
  f1, f2, f3, f4, f5 = encoder_forward(params, both)
  x_mov_1, x_fix_1 = f1[:n], f1[n:]
  x_mov_2, x_fix_2 = f2[:n], f2[n:]
  x_mov_3, x_fix_3 = f3[:n], f3[n:]
  x_mov_4, x_fix_4 = f4[:n], f4[n:]
  x_mov_5, x_fix_5 = f5[:n], f5[n:]

  # level 5
  corr_5, _ = match_corr_last(x_mov_5, x_fix_5, post)
  cat = jnp.concatenate([x_mov_5, corr_5, x_fix_5], axis=-1)
  conv_corr_5 = conv3d_block(cat, params["conv5"], apply_norm=True, apply_relu=True)
  flow_5 = conv3d_block(conv_corr_5, params["rh5"], apply_norm=False, apply_relu=False)
  flow_5_up = resize_flow_x2(flow_5)

  # level 4
  x_mov_4 = spatial_transformer(x_mov_4, flow_5_up)
  corr_4, _ = match_corr(x_mov_4, x_fix_4, post)
  cat = jnp.concatenate([x_mov_4, corr_4, x_fix_4], axis=-1)
  conv_corr_4 = conv3d_block(cat, params["conv4"], apply_norm=True, apply_relu=True)
  flow_4 = conv3d_block(conv_corr_4, params["rh4"], apply_norm=False, apply_relu=False)
  flow_4 = flow_4 + flow_5_up
  flow_4_up = resize_flow_x2(flow_4)

  # level 3
  x_mov_3 = spatial_transformer(x_mov_3, flow_4_up)
  corr_3, _ = match_corr(x_mov_3, x_fix_3, post)
  cat = jnp.concatenate([x_mov_3, corr_3, x_fix_3], axis=-1)
  conv_corr_3 = conv3d_block(cat, params["conv3"], apply_norm=True, apply_relu=True)
  flow_3 = conv3d_block(conv_corr_3, params["rh3"], apply_norm=False, apply_relu=False)
  flow_3 = flow_3 + flow_4_up
  flow_3_up = resize_flow_x2(flow_3)

  # level 2 (note: reproduces the original code's reassignment of flow_3_up)
  x_mov_2 = spatial_transformer(x_mov_2, flow_3_up)
  flow_3_up = resize_flow_x2(flow_4_up)
  corr_2, _ = match_corr(x_mov_2, x_fix_2, post)
  cat = jnp.concatenate([x_mov_2, corr_2, x_fix_2], axis=-1)
  conv_corr_2 = conv3d_block(cat, params["conv2"], apply_norm=True, apply_relu=True)
  flow_2 = conv3d_block(conv_corr_2, params["rh2"], apply_norm=False, apply_relu=False)
  flow_2 = flow_2 + flow_3_up
  flow_2_up = resize_flow_x2(flow_2)

  # level 1
  x_mov_1 = spatial_transformer(x_mov_1, flow_2_up)
  cat = jnp.concatenate([x_mov_1, x_fix_1], axis=-1)
  conv_corr_1 = conv3d_block(cat, params["conv1"], apply_norm=True, apply_relu=True)
  flow_1 = conv3d_block(conv_corr_1, params["rh1"], apply_norm=False, apply_relu=False)
  flow_1 = flow_1 + flow_2_up

  moved = spatial_transformer(moving, flow_1)
  return moved, flow_1


# --------------------------------------------------------------------------
# Main
# --------------------------------------------------------------------------
if __name__ == "__main__":
  key = jax.random.PRNGKey(0)
  k_p, k_m, k_f, k_cx, k_cw, k_cb = jax.random.split(key, 6)

  # --- lightweight conv self-check against lax.conv_general_dilated ---------
  cx = jax.random.normal(k_cx, (1, 8, 8, 8, 6), jnp.float32)
  cw = jax.random.normal(k_cw, (27, 16, 6), jnp.float32) * 0.05
  cb = jax.random.normal(k_cb, (16,), jnp.float32) * 0.1
  chk = jax.jit(lambda a, ww, bb: conv3d_block(
      a, {"w": ww, "b": bb}, apply_norm=False, apply_relu=False))
  got = chk(cx, cw, cb)
  w_ref = jnp.transpose(cw.reshape(3, 3, 3, 16, 6), (0, 1, 2, 4, 3))
  ref = jax.lax.conv_general_dilated(
      cx, w_ref, window_strides=(1, 1, 1), padding=[(1, 1)] * 3,
      dimension_numbers=("NDHWC", "DHWIO", "NDHWC")) + cb
  err = float(jnp.max(jnp.abs(got - ref)))
  assert err < 0.08, f"conv3d self-check failed: max abs err = {err}"

  # --- RegMamba forward ------------------------------------------------------
  cn = 4
  N, D, H, W = 1, 16, 16, 16
  params = init_params(k_p, cn=cn, k_corr=27)
  moving = jax.random.normal(k_m, (N, D, H, W, 1), jnp.float32)  # NDHWC layout
  fixed = jax.random.normal(k_f, (N, D, H, W, 1), jnp.float32)

  fwd = jax.jit(regmamba_forward)
  moved, flow_1 = fwd(params, moving, fixed)
  jax.block_until_ready((moved, flow_1))

  assert moved.shape == (N, D, H, W, 1)
  assert flow_1.shape == (N, D, H, W, 3)
  print("KERNEL_OK")
</pallas_src>

<mosaic_0001>
module attributes {stable_mosaic.version = 11 : i64} {
  func.func @_conv3d_kernel(%arg0: i32, %arg1: i32, %arg2: memref<1x1x8x82xbf16, #tpu.memory_space<vmem>>, %arg3: memref<1x1x8x82xbf16, #tpu.memory_space<vmem>>, %arg4: memref<1x1x8x82xbf16, #tpu.memory_space<vmem>>, %arg5: memref<27x16x8xbf16, #tpu.memory_space<vmem>>, %arg6: memref<2x64xbf16, #tpu.memory_space<vmem>>, %arg7: memref<16x1xf32, #tpu.memory_space<vmem>>, %arg8: memref<1x1x16x64xf32, #tpu.memory_space<vmem>>) attributes {dimension_semantics = [#tpu.dimension_semantics<parallel>, #tpu.dimension_semantics<parallel>], iteration_bounds = array<i64: 1, 8>, scalar_prefetch = 0 : i64, scratch_operands = 0 : i64, tpu.core_type = #tpu.core_type<tc>, window_params = [{transform_indices = @transform_0, window_bounds = array<i64: 1, 1, 8, 82>}, {transform_indices = @transform_1, window_bounds = array<i64: 1, 1, 8, 82>}, {transform_indices = @transform_2, window_bounds = array<i64: 1, 1, 8, 82>}, {pipeline_mode = #tpu.pipeline_mode<synchronous>, transform_indices = @transform_3, window_bounds = array<i64: 27, 16, 8>}, {pipeline_mode = #tpu.pipeline_mode<synchronous>, transform_indices = @transform_4, window_bounds = array<i64: 2, 64>}, {pipeline_mode = #tpu.pipeline_mode<synchronous>, transform_indices = @transform_5, window_bounds = array<i64: 16, 1>}, {transform_indices = @transform_6, window_bounds = array<i64: 1, 1, 16, 64>}]} {
    %c0 = arith.constant 0 : index
    %c0_0 = arith.constant 0 : index
    %0 = vector.load %arg6[%c0, %c0_0] : memref<2x64xbf16, #tpu.memory_space<vmem>>, vector<2x64xbf16>
    %1 = vector.extract_strided_slice %0 {offsets = [0, 0], sizes = [1, 64], strides = [1, 1]} : vector<2x64xbf16> to vector<1x64xbf16>
    %2 = vector.extract_strided_slice %0 {offsets = [1, 0], sizes = [1, 64], strides = [1, 1]} : vector<2x64xbf16> to vector<1x64xbf16>
    %c0_1 = arith.constant 0 : index
    %c0_2 = arith.constant 0 : index
    %c0_3 = arith.constant 0 : index
    %c0_4 = arith.constant 0 : index
    %3 = vector.load %arg2[%c0_1, %c0_2, %c0_3, %c0_4] : memref<1x1x8x82xbf16, #tpu.memory_space<vmem>>, vector<1x1x8x82xbf16>
    %4 = vector.shape_cast %3 : vector<1x1x8x82xbf16> to vector<8x82xbf16>
    %c0_5 = arith.constant 0 : index
    %c0_6 = arith.constant 0 : index
    %c0_7 = arith.constant 0 : index
    %c0_8 = arith.constant 0 : index
    %5 = vector.load %arg3[%c0_5, %c0_6, %c0_7, %c0_8] : memref<1x1x8x82xbf16, #tpu.memory_space<vmem>>, vector<1x1x8x82xbf16>
    %6 = vector.shape_cast %5 : vector<1x1x8x82xbf16> to vector<8x82xbf16>
    %c0_9 = arith.constant 0 : index
    %c0_10 = arith.constant 0 : index
    %c0_11 = arith.constant 0 : index
    %c0_12 = arith.constant 0 : index
    %7 = vector.load %arg4[%c0_9, %c0_10, %c0_11, %c0_12] : memref<1x1x8x82xbf16, #tpu.memory_space<vmem>>, vector<1x1x8x82xbf16>
    %8 = vector.shape_cast %7 : vector<1x1x8x82xbf16> to vector<8x82xbf16>
    %cst = arith.constant 0.000000e+00 : f32
    %9 = vector.broadcast %cst : f32 to vector<16x64xf32>
    %10 = vector.extract_strided_slice %4 {offsets = [0, 0], sizes = [8, 64], strides = [1, 1]} : vector<8x82xbf16> to vector<8x64xbf16>
    %11 = vector.broadcast %1 : vector<1x64xbf16> to vector<8x64xbf16>
    %12 = arith.mulf %10, %11 : vector<8x64xbf16>
    %c0_13 = arith.constant 0 : index
    %c0_14 = arith.constant 0 : index
    %c0_15 = arith.constant 0 : index
    %13 = vector.load %arg5[%c0_13, %c0_14, %c0_15] : memref<27x16x8xbf16, #tpu.memory_space<vmem>>, vector<1x16x8xbf16>
    %14 = vector.shape_cast %13 : vector<1x16x8xbf16> to vector<16x8xbf16>
    %cst_16 = arith.constant dense<0.000000e+00> : vector<16x64xf32>
    %15 = tpu.matmul %14, %12, %cst_16 {dimension_numbers = #tpu.dot_dimension_numbers<[1], [0], [0], [1], [0, 0, 1, 1], [], []>} : vector<16x8xbf16>, vector<8x64xbf16>, vector<16x64xf32> -> vector<16x64xf32>
    %16 = arith.addf %9, %15 : vector<16x64xf32>
    %17 = vector.extract_strided_slice %4 {offsets = [0, 1], sizes = [8, 64], strides = [1, 1]} : vector<8x82xbf16> to vector<8x64xbf16>
    %c1 = arith.constant 1 : index
    %c0_17 = arith.constant 0 : index
    %c0_18 = arith.constant 0 : index
    %18 = vector.load %arg5[%c1, %c0_17, %c0_18] : memref<27x16x8xbf16, #tpu.memory_space<vmem>>, vector<1x16x8xbf16>
    %19 = vector.shape_cast %18 : vector<1x16x8xbf16> to vector<16x8xbf16>
    %cst_19 = arith.constant dense<0.000000e+00> : vector<16x64xf32>
    %20 = tpu.matmul %19, %17, %cst_19 {dimension_numbers = #tpu.dot_dimension_numbers<[1], [0], [0], [1], [0, 0, 1, 1], [], []>} : vector<16x8xbf16>, vector<8x64xbf16>, vector<16x64xf32> -> vector<16x64xf32>
    %21 = arith.addf %16, %20 : vector<16x64xf32>
    %22 = vector.extract_strided_slice %4 {offsets = [0, 2], sizes = [8, 64], strides = [1, 1]} : vector<8x82xbf16> to vector<8x64xbf16>
    %23 = vector.broadcast %2 : vector<1x64xbf16> to vector<8x64xbf16>
    %24 = arith.mulf %22, %23 : vector<8x64xbf16>
    %c2 = arith.constant 2 : index
    %c0_20 = arith.constant 0 : index
    %c0_21 = arith.constant 0 : index
    %25 = vector.load %arg5[%c2, %c0_20, %c0_21] : memref<27x16x8xbf16, #tpu.memory_space<vmem>>, vector<1x16x8xbf16>
    %26 = vector.shape_cast %25 : vector<1x16x8xbf16> to vector<16x8xbf16>
    %cst_22 = arith.constant dense<0.000000e+00> : vector<16x64xf32>
    %27 = tpu.matmul %26, %24, %cst_22 {dimension_numbers = #tpu.dot_dimension_numbers<[1], [0], [0], [1], [0, 0, 1, 1], [], []>} : vector<16x8xbf16>, vector<8x64xbf16>, vector<16x64xf32> -> vector<16x64xf32>
    %28 = arith.addf %21, %27 : vector<16x64xf32>
    %29 = vector.extract_strided_slice %4 {offsets = [0, 8], sizes = [8, 64], strides = [1, 1]} : vector<8x82xbf16> to vector<8x64xbf16>
    %30 = vector.broadcast %1 : vector<1x64xbf16> to vector<8x64xbf16>
    %31 = arith.mulf %29, %30 : vector<8x64xbf16>
    %c3 = arith.constant 3 : index
    %c0_23 = arith.constant 0 : index
    %c0_24 = arith.constant 0 : index
    %32 = vector.load %arg5[%c3, %c0_23, %c0_24] : memref<27x16x8xbf16, #tpu.memory_space<vmem>>, vector<1x16x8xbf16>
    %33 = vector.shape_cast %32 : vector<1x16x8xbf16> to vector<16x8xbf16>
    %cst_25 = arith.constant dense<0.000000e+00> : vector<16x64xf32>
    %34 = tpu.matmul %33, %31, %cst_25 {dimension_numbers = #tpu.dot_dimension_numbers<[1], [0], [0], [1], [0, 0, 1, 1], [], []>} : vector<16x8xbf16>, vector<8x64xbf16>, vector<16x64xf32> -> vector<16x64xf32>
    %35 = arith.addf %28, %34 : vector<16x64xf32>
    %36 = vector.extract_strided_slice %4 {offsets = [0, 9], sizes = [8, 64], strides = [1, 1]} : vector<8x82xbf16> to vector<8x64xbf16>
    %c4 = arith.constant 4 : index
    %c0_26 = arith.constant 0 : index
    %c0_27 = arith.constant 0 : index
    %37 = vector.load %arg5[%c4, %c0_26, %c0_27] : memref<27x16x8xbf16, #tpu.memory_space<vmem>>, vector<1x16x8xbf16>
    %38 = vector.shape_cast %37 : vector<1x16x8xbf16> to vector<16x8xbf16>
    %cst_28 = arith.constant dense<0.000000e+00> : vector<16x64xf32>
    %39 = tpu.matmul %38, %36, %cst_28 {dimension_numbers = #tpu.dot_dimension_numbers<[1], [0], [0], [1], [0, 0, 1, 1], [], []>} : vector<16x8xbf16>, vector<8x64xbf16>, vector<16x64xf32> -> vector<16x64xf32>
    %40 = arith.addf %35, %39 : vector<16x64xf32>
    %41 = vector.extract_strided_slice %4 {offsets = [0, 10], sizes = [8, 64], strides = [1, 1]} : vector<8x82xbf16> to vector<8x64xbf16>
    %42 = vector.broadcast %2 : vector<1x64xbf16> to vector<8x64xbf16>
    %43 = arith.mulf %41, %42 : vector<8x64xbf16>
    %c5 = arith.constant 5 : index
    %c0_29 = arith.constant 0 : index
    %c0_30 = arith.constant 0 : index
    %44 = vector.load %arg5[%c5, %c0_29, %c0_30] : memref<27x16x8xbf16, #tpu.memory_space<vmem>>, vector<1x16x8xbf16>
    %45 = vector.shape_cast %44 : vector<1x16x8xbf16> to vector<16x8xbf16>
    %cst_31 = arith.constant dense<0.000000e+00> : vector<16x64xf32>
    %46 = tpu.matmul %45, %43, %cst_31 {dimension_numbers = #tpu.dot_dimension_numbers<[1], [0], [0], [1], [0, 0, 1, 1], [], []>} : vector<16x8xbf16>, vector<8x64xbf16>, vector<16x64xf32> -> vector<16x64xf32>
    %47 = arith.addf %40, %46 : vector<16x64xf32>
    %48 = vector.extract_strided_slice %4 {offsets = [0, 16], sizes = [8, 64], strides = [1, 1]} : vector<8x82xbf16> to vector<8x64xbf16>
    %49 = vector.broadcast %1 : vector<1x64xbf16> to vector<8x64xbf16>
    %50 = arith.mulf %48, %49 : vector<8x64xbf16>
    %c6 = arith.constant 6 : index
    %c0_32 = arith.constant 0 : index
    %c0_33 = arith.constant 0 : index
    %51 = vector.load %arg5[%c6, %c0_32, %c0_33] : memref<27x16x8xbf16, #tpu.memory_space<vmem>>, vector<1x16x8xbf16>
    %52 = vector.shape_cast %51 : vector<1x16x8xbf16> to vector<16x8xbf16>
    %cst_34 = arith.constant dense<0.000000e+00> : vector<16x64xf32>
    %53 = tpu.matmul %52, %50, %cst_34 {dimension_numbers = #tpu.dot_dimension_numbers<[1], [0], [0], [1], [0, 0, 1, 1], [], []>} : vector<16x8xbf16>, vector<8x64xbf16>, vector<16x64xf32> -> vector<16x64xf32>
    %54 = arith.addf %47, %53 : vector<16x64xf32>
    %55 = vector.extract_strided_slice %4 {offsets = [0, 17], sizes = [8, 64], strides = [1, 1]} : vector<8x82xbf16> to vector<8x64xbf16>
    %c7 = arith.constant 7 : index
    %c0_35 = arith.constant 0 : index
    %c0_36 = arith.constant 0 : index
    %56 = vector.load %arg5[%c7, %c0_35, %c0_36] : memref<27x16x8xbf16, #tpu.memory_space<vmem>>, vector<1x16x8xbf16>
    %57 = vector.shape_cast %56 : vector<1x16x8xbf16> to vector<16x8xbf16>
    %cst_37 = arith.constant dense<0.000000e+00> : vector<16x64xf32>
    %58 = tpu.matmul %57, %55, %cst_37 {dimension_numbers = #tpu.dot_dimension_numbers<[1], [0], [0], [1], [0, 0, 1, 1], [], []>} : vector<16x8xbf16>, vector<8x64xbf16>, vector<16x64xf32> -> vector<16x64xf32>
    %59 = arith.addf %54, %58 : vector<16x64xf32>
    %60 = vector.extract_strided_slice %4 {offsets = [0, 18], sizes = [8, 64], strides = [1, 1]} : vector<8x82xbf16> to vector<8x64xbf16>
    %61 = vector.broadcast %2 : vector<1x64xbf16> to vector<8x64xbf16>
    %62 = arith.mulf %60, %61 : vector<8x64xbf16>
    %c8 = arith.constant 8 : index
    %c0_38 = arith.constant 0 : index
    %c0_39 = arith.constant 0 : index
    %63 = vector.load %arg5[%c8, %c0_38, %c0_39] : memref<27x16x8xbf16, #tpu.memory_space<vmem>>, vector<1x16x8xbf16>
    %64 = vector.shape_cast %63 : vector<1x16x8xbf16> to vector<16x8xbf16>
    %cst_40 = arith.constant dense<0.000000e+00> : vector<16x64xf32>
    %65 = tpu.matmul %64, %62, %cst_40 {dimension_numbers = #tpu.dot_dimension_numbers<[1], [0], [0], [1], [0, 0, 1, 1], [], []>} : vector<16x8xbf16>, vector<8x64xbf16>, vector<16x64xf32> -> vector<16x64xf32>
    %66 = arith.addf %59, %65 : vector<16x64xf32>
    %67 = vector.extract_strided_slice %6 {offsets = [0, 0], sizes = [8, 64], strides = [1, 1]} : vector<8x82xbf16> to vector<8x64xbf16>
    %68 = vector.broadcast %1 : vector<1x64xbf16> to vector<8x64xbf16>
    %69 = arith.mulf %67, %68 : vector<8x64xbf16>
    %c9 = arith.constant 9 : index
    %c0_41 = arith.constant 0 : index
    %c0_42 = arith.constant 0 : index
    %70 = vector.load %arg5[%c9, %c0_41, %c0_42] : memref<27x16x8xbf16, #tpu.memory_space<vmem>>, vector<1x16x8xbf16>
    %71 = vector.shape_cast %70 : vector<1x16x8xbf16> to vector<16x8xbf16>
    %cst_43 = arith.constant dense<0.000000e+00> : vector<16x64xf32>
    %72 = tpu.matmul %71, %69, %cst_43 {dimension_numbers = #tpu.dot_dimension_numbers<[1], [0], [0], [1], [0, 0, 1, 1], [], []>} : vector<16x8xbf16>, vector<8x64xbf16>, vector<16x64xf32> -> vector<16x64xf32>
    %73 = arith.addf %66, %72 : vector<16x64xf32>
    %74 = vector.extract_strided_slice %6 {offsets = [0, 1], sizes = [8, 64], strides = [1, 1]} : vector<8x82xbf16> to vector<8x64xbf16>
    %c10 = arith.constant 10 : index
    %c0_44 = arith.constant 0 : index
    %c0_45 = arith.constant 0 : index
    %75 = vector.load %arg5[%c10, %c0_44, %c0_45] : memref<27x16x8xbf16, #tpu.memory_space<vmem>>, vector<1x16x8xbf16>
    %76 = vector.shape_cast %75 : vector<1x16x8xbf16> to vector<16x8xbf16>
    %cst_46 = arith.constant dense<0.000000e+00> : vector<16x64xf32>
    %77 = tpu.matmul %76, %74, %cst_46 {dimension_numbers = #tpu.dot_dimension_numbers<[1], [0], [0], [1], [0, 0, 1, 1], [], []>} : vector<16x8xbf16>, vector<8x64xbf16>, vector<16x64xf32> -> vector<16x64xf32>
    %78 = arith.addf %73, %77 : vector<16x64xf32>
    %79 = vector.extract_strided_slice %6 {offsets = [0, 2], sizes = [8, 64], strides = [1, 1]} : vector<8x82xbf16> to vector<8x64xbf16>
    %80 = vector.broadcast %2 : vector<1x64xbf16> to vector<8x64xbf16>
    %81 = arith.mulf %79, %80 : vector<8x64xbf16>
    %c11 = arith.constant 11 : index
    %c0_47 = arith.constant 0 : index
    %c0_48 = arith.constant 0 : index
    %82 = vector.load %arg5[%c11, %c0_47, %c0_48] : memref<27x16x8xbf16, #tpu.memory_space<vmem>>, vector<1x16x8xbf16>
    %83 = vector.shape_cast %82 : vector<1x16x8xbf16> to vector<16x8xbf16>
    %cst_49 = arith.constant dense<0.000000e+00> : vector<16x64xf32>
    %84 = tpu.matmul %83, %81, %cst_49 {dimension_numbers = #tpu.dot_dimension_numbers<[1], [0], [0], [1], [0, 0, 1, 1], [], []>} : vector<16x8xbf16>, vector<8x64xbf16>, vector<16x64xf32> -> vector<16x64xf32>
    %85 = arith.addf %78, %84 : vector<16x64xf32>
    %86 = vector.extract_strided_slice %6 {offsets = [0, 8], sizes = [8, 64], strides = [1, 1]} : vector<8x82xbf16> to vector<8x64xbf16>
    %87 = vector.broadcast %1 : vector<1x64xbf16> to vector<8x64xbf16>
    %88 = arith.mulf %86, %87 : vector<8x64xbf16>
    %c12 = arith.constant 12 : index
    %c0_50 = arith.constant 0 : index
    %c0_51 = arith.constant 0 : index
    %89 = vector.load %arg5[%c12, %c0_50, %c0_51] : memref<27x16x8xbf16, #tpu.memory_space<vmem>>, vector<1x16x8xbf16>
    %90 = vector.shape_cast %89 : vector<1x16x8xbf16> to vector<16x8xbf16>
    %cst_52 = arith.constant dense<0.000000e+00> : vector<16x64xf32>
    %91 = tpu.matmul %90, %88, %cst_52 {dimension_numbers = #tpu.dot_dimension_numbers<[1], [0], [0], [1], [0, 0, 1, 1], [], []>} : vector<16x8xbf16>, vector<8x64xbf16>, vector<16x64xf32> -> vector<16x64xf32>
    %92 = arith.addf %85, %91 : vector<16x64xf32>
    %93 = vector.extract_strided_slice %6 {offsets = [0, 9], sizes = [8, 64], strides = [1, 1]} : vector<8x82xbf16> to vector<8x64xbf16>
    %c13 = arith.constant 13 : index
    %c0_53 = arith.constant 0 : index
    %c0_54 = arith.constant 0 : index
    %94 = vector.load %arg5[%c13, %c0_53, %c0_54] : memref<27x16x8xbf16, #tpu.memory_space<vmem>>, vector<1x16x8xbf16>
    %95 = vector.shape_cast %94 : vector<1x16x8xbf16> to vector<16x8xbf16>
    %cst_55 = arith.constant dense<0.000000e+00> : vector<16x64xf32>
    %96 = tpu.matmul %95, %93, %cst_55 {dimension_numbers = #tpu.dot_dimension_numbers<[1], [0], [0], [1], [0, 0, 1, 1], [], []>} : vector<16x8xbf16>, vector<8x64xbf16>, vector<16x64xf32> -> vector<16x64xf32>
    %97 = arith.addf %92, %96 : vector<16x64xf32>
    %98 = vector.extract_strided_slice %6 {offsets = [0, 10], sizes = [8, 64], strides = [1, 1]} : vector<8x82xbf16> to vector<8x64xbf16>
    %99 = vector.broadcast %2 : vector<1x64xbf16> to vector<8x64xbf16>
    %100 = arith.mulf %98, %99 : vector<8x64xbf16>
    %c14 = arith.constant 14 : index
    %c0_56 = arith.constant 0 : index
    %c0_57 = arith.constant 0 : index
    %101 = vector.load %arg5[%c14, %c0_56, %c0_57] : memref<27x16x8xbf16, #tpu.memory_space<vmem>>, vector<1x16x8xbf16>
    %102 = vector.shape_cast %101 : vector<1x16x8xbf16> to vector<16x8xbf16>
    %cst_58 = arith.constant dense<0.000000e+00> : vector<16x64xf32>
    %103 = tpu.matmul %102, %100, %cst_58 {dimension_numbers = #tpu.dot_dimension_numbers<[1], [0], [0], [1], [0, 0, 1, 1], [], []>} : vector<16x8xbf16>, vector<8x64xbf16>, vector<16x64xf32> -> vector<16x64xf32>
    %104 = arith.addf %97, %103 : vector<16x64xf32>
    %105 = vector.extract_strided_slice %6 {offsets = [0, 16], sizes = [8, 64], strides = [1, 1]} : vector<8x82xbf16> to vector<8x64xbf16>
    %106 = vector.broadcast %1 : vector<1x64xbf16> to vector<8x64xbf16>
    %107 = arith.mulf %105, %106 : vector<8x64xbf16>
    %c15 = arith.constant 15 : index
    %c0_59 = arith.constant 0 : index
    %c0_60 = arith.constant 0 : index
    %108 = vector.load %arg5[%c15, %c0_59, %c0_60] : memref<27x16x8xbf16, #tpu.memory_space<vmem>>, vector<1x16x8xbf16>
    %109 = vector.shape_cast %108 : vector<1x16x8xbf16> to vector<16x8xbf16>
    %cst_61 = arith.constant dense<0.000000e+00> : vector<16x64xf32>
    %110 = tpu.matmul %109, %107, %cst_61 {dimension_numbers = #tpu.dot_dimension_numbers<[1], [0], [0], [1], [0, 0, 1, 1], [], []>} : vector<16x8xbf16>, vector<8x64xbf16>, vector<16x64xf32> -> vector<16x64xf32>
    %111 = arith.addf %104, %110 : vector<16x64xf32>
    %112 = vector.extract_strided_slice %6 {offsets = [0, 17], sizes = [8, 64], strides = [1, 1]} : vector<8x82xbf16> to vector<8x64xbf16>
    %c16 = arith.constant 16 : index
    %c0_62 = arith.constant 0 : index
    %c0_63 = arith.constant 0 : index
    %113 = vector.load %arg5[%c16, %c0_62, %c0_63] : memref<27x16x8xbf16, #tpu.memory_space<vmem>>, vector<1x16x8xbf16>
    %114 = vector.shape_cast %113 : vector<1x16x8xbf16> to vector<16x8xbf16>
    %cst_64 = arith.constant dense<0.000000e+00> : vector<16x64xf32>
    %115 = tpu.matmul %114, %112, %cst_64 {dimension_numbers = #tpu.dot_dimension_numbers<[1], [0], [0], [1], [0, 0, 1, 1], [], []>} : vector<16x8xbf16>, vector<8x64xbf16>, vector<16x64xf32> -> vector<16x64xf32>
    %116 = arith.addf %111, %115 : vector<16x64xf32>
    %117 = vector.extract_strided_slice %6 {offsets = [0, 18], sizes = [8, 64], strides = [1, 1]} : vector<8x82xbf16> to vector<8x64xbf16>
    %118 = vector.broadcast %2 : vector<1x64xbf16> to vector<8x64xbf16>
    %119 = arith.mulf %117, %118 : vector<8x64xbf16>
    %c17 = arith.constant 17 : index
    %c0_65 = arith.constant 0 : index
    %c0_66 = arith.constant 0 : index
    %120 = vector.load %arg5[%c17, %c0_65, %c0_66] : memref<27x16x8xbf16, #tpu.memory_space<vmem>>, vector<1x16x8xbf16>
    %121 = vector.shape_cast %120 : vector<1x16x8xbf16> to vector<16x8xbf16>
    %cst_67 = arith.constant dense<0.000000e+00> : vector<16x64xf32>
    %122 = tpu.matmul %121, %119, %cst_67 {dimension_numbers = #tpu.dot_dimension_numbers<[1], [0], [0], [1], [0, 0, 1, 1], [], []>} : vector<16x8xbf16>, vector<8x64xbf16>, vector<16x64xf32> -> vector<16x64xf32>
    %123 = arith.addf %116, %122 : vector<16x64xf32>
    %124 = vector.extract_strided_slice %8 {offsets = [0, 0], sizes = [8, 64], strides = [1, 1]} : vector<8x82xbf16> to vector<8x64xbf16>
    %125 = vector.broadcast %1 : vector<1x64xbf16> to vector<8x64xbf16>
    %126 = arith.mulf %124, %125 : vector<8x64xbf16>
    %c18 = arith.constant 18 : index
    %c0_68 = arith.constant 0 : index
    %c0_69 = arith.constant 0 : index
    %127 = vector.load %arg5[%c18, %c0_68, %c0_69] : memref<27x16x8xbf16, #tpu.memory_space<vmem>>, vector<1x16x8xbf16>
    %128 = vector.shape_cast %127 : vector<1x16x8xbf16> to vector<16x8xbf16>
    %cst_70 = arith.constant dense<0.000000e+00> : vector<16x64xf32>
    %129 = tpu.matmul %128, %126, %cst_70 {dimension_numbers = #tpu.dot_dimension_numbers<[1], [0], [0], [1], [0, 0, 1, 1], [], []>} : vector<16x8xbf16>, vector<8x64xbf16>, vector<16x64xf32> -> vector<16x64xf32>
    %130 = arith.addf %123, %129 : vector<16x64xf32>
    %131 = vector.extract_strided_slice %8 {offsets = [0, 1], sizes = [8, 64], strides = [1, 1]} : vector<8x82xbf16> to vector<8x64xbf16>
    %c19 = arith.constant 19 : index
    %c0_71 = arith.constant 0 : index
    %c0_72 = arith.constant 0 : index
    %132 = vector.load %arg5[%c19, %c0_71, %c0_72] : memref<27x16x8xbf16, #tpu.memory_space<vmem>>, vector<1x16x8xbf16>
    %133 = vector.shape_cast %132 : vector<1x16x8xbf16> to vector<16x8xbf16>
    %cst_73 = arith.constant dense<0.000000e+00> : vector<16x64xf32>
    %134 = tpu.matmul %133, %131, %cst_73 {dimension_numbers = #tpu.dot_dimension_numbers<[1], [0], [0], [1], [0, 0, 1, 1], [], []>} : vector<16x8xbf16>, vector<8x64xbf16>, vector<16x64xf32> -> vector<16x64xf32>
    %135 = arith.addf %130, %134 : vector<16x64xf32>
    %136 = vector.extract_strided_slice %8 {offsets = [0, 2], sizes = [8, 64], strides = [1, 1]} : vector<8x82xbf16> to vector<8x64xbf16>
    %137 = vector.broadcast %2 : vector<1x64xbf16> to vector<8x64xbf16>
    %138 = arith.mulf %136, %137 : vector<8x64xbf16>
    %c20 = arith.constant 20 : index
    %c0_74 = arith.constant 0 : index
    %c0_75 = arith.constant 0 : index
    %139 = vector.load %arg5[%c20, %c0_74, %c0_75] : memref<27x16x8xbf16, #tpu.memory_space<vmem>>, vector<1x16x8xbf16>
    %140 = vector.shape_cast %139 : vector<1x16x8xbf16> to vector<16x8xbf16>
    %cst_76 = arith.constant dense<0.000000e+00> : vector<16x64xf32>
    %141 = tpu.matmul %140, %138, %cst_76 {dimension_numbers = #tpu.dot_dimension_numbers<[1], [0], [0], [1], [0, 0, 1, 1], [], []>} : vector<16x8xbf16>, vector<8x64xbf16>, vector<16x64xf32> -> vector<16x64xf32>
    %142 = arith.addf %135, %141 : vector<16x64xf32>
    %143 = vector.extract_strided_slice %8 {offsets = [0, 8], sizes = [8, 64], strides = [1, 1]} : vector<8x82xbf16> to vector<8x64xbf16>
    %144 = vector.broadcast %1 : vector<1x64xbf16> to vector<8x64xbf16>
    %145 = arith.mulf %143, %144 : vector<8x64xbf16>
    %c21 = arith.constant 21 : index
    %c0_77 = arith.constant 0 : index
    %c0_78 = arith.constant 0 : index
    %146 = vector.load %arg5[%c21, %c0_77, %c0_78] : memref<27x16x8xbf16, #tpu.memory_space<vmem>>, vector<1x16x8xbf16>
    %147 = vector.shape_cast %146 : vector<1x16x8xbf16> to vector<16x8xbf16>
    %cst_79 = arith.constant dense<0.000000e+00> : vector<16x64xf32>
    %148 = tpu.matmul %147, %145, %cst_79 {dimension_numbers = #tpu.dot_dimension_numbers<[1], [0], [0], [1], [0, 0, 1, 1], [], []>} : vector<16x8xbf16>, vector<8x64xbf16>, vector<16x64xf32> -> vector<16x64xf32>
    %149 = arith.addf %142, %148 : vector<16x64xf32>
    %150 = vector.extract_strided_slice %8 {offsets = [0, 9], sizes = [8, 64], strides = [1, 1]} : vector<8x82xbf16> to vector<8x64xbf16>
    %c22 = arith.constant 22 : index
    %c0_80 = arith.constant 0 : index
    %c0_81 = arith.constant 0 : index
    %151 = vector.load %arg5[%c22, %c0_80, %c0_81] : memref<27x16x8xbf16, #tpu.memory_space<vmem>>, vector<1x16x8xbf16>
    %152 = vector.shape_cast %151 : vector<1x16x8xbf16> to vector<16x8xbf16>
    %cst_82 = arith.constant dense<0.000000e+00> : vector<16x64xf32>
    %153 = tpu.matmul %152, %150, %cst_82 {dimension_numbers = #tpu.dot_dimension_numbers<[1], [0], [0], [1], [0, 0, 1, 1], [], []>} : vector<16x8xbf16>, vector<8x64xbf16>, vector<16x64xf32> -> vector<16x64xf32>
    %154 = arith.addf %149, %153 : vector<16x64xf32>
    %155 = vector.extract_strided_slice %8 {offsets = [0, 10], sizes = [8, 64], strides = [1, 1]} : vector<8x82xbf16> to vector<8x64xbf16>
    %156 = vector.broadcast %2 : vector<1x64xbf16> to vector<8x64xbf16>
    %157 = arith.mulf %155, %156 : vector<8x64xbf16>
    %c23 = arith.constant 23 : index
    %c0_83 = arith.constant 0 : index
    %c0_84 = arith.constant 0 : index
    %158 = vector.load %arg5[%c23, %c0_83, %c0_84] : memref<27x16x8xbf16, #tpu.memory_space<vmem>>, vector<1x16x8xbf16>
    %159 = vector.shape_cast %158 : vector<1x16x8xbf16> to vector<16x8xbf16>
    %cst_85 = arith.constant dense<0.000000e+00> : vector<16x64xf32>
    %160 = tpu.matmul %159, %157, %cst_85 {dimension_numbers = #tpu.dot_dimension_numbers<[1], [0], [0], [1], [0, 0, 1, 1], [], []>} : vector<16x8xbf16>, vector<8x64xbf16>, vector<16x64xf32> -> vector<16x64xf32>
    %161 = arith.addf %154, %160 : vector<16x64xf32>
    %162 = vector.extract_strided_slice %8 {offsets = [0, 16], sizes = [8, 64], strides = [1, 1]} : vector<8x82xbf16> to vector<8x64xbf16>
    %163 = vector.broadcast %1 : vector<1x64xbf16> to vector<8x64xbf16>
    %164 = arith.mulf %162, %163 : vector<8x64xbf16>
    %c24 = arith.constant 24 : index
    %c0_86 = arith.constant 0 : index
    %c0_87 = arith.constant 0 : index
    %165 = vector.load %arg5[%c24, %c0_86, %c0_87] : memref<27x16x8xbf16, #tpu.memory_space<vmem>>, vector<1x16x8xbf16>
    %166 = vector.shape_cast %165 : vector<1x16x8xbf16> to vector<16x8xbf16>
    %cst_88 = arith.constant dense<0.000000e+00> : vector<16x64xf32>
    %167 = tpu.matmul %166, %164, %cst_88 {dimension_numbers = #tpu.dot_dimension_numbers<[1], [0], [0], [1], [0, 0, 1, 1], [], []>} : vector<16x8xbf16>, vector<8x64xbf16>, vector<16x64xf32> -> vector<16x64xf32>
    %168 = arith.addf %161, %167 : vector<16x64xf32>
    %169 = vector.extract_strided_slice %8 {offsets = [0, 17], sizes = [8, 64], strides = [1, 1]} : vector<8x82xbf16> to vector<8x64xbf16>
    %c25 = arith.constant 25 : index
    %c0_89 = arith.constant 0 : index
    %c0_90 = arith.constant 0 : index
    %170 = vector.load %arg5[%c25, %c0_89, %c0_90] : memref<27x16x8xbf16, #tpu.memory_space<vmem>>, vector<1x16x8xbf16>
    %171 = vector.shape_cast %170 : vector<1x16x8xbf16> to vector<16x8xbf16>
    %cst_91 = arith.constant dense<0.000000e+00> : vector<16x64xf32>
    %172 = tpu.matmul %171, %169, %cst_91 {dimension_numbers = #tpu.dot_dimension_numbers<[1], [0], [0], [1], [0, 0, 1, 1], [], []>} : vector<16x8xbf16>, vector<8x64xbf16>, vector<16x64xf32> -> vector<16x64xf32>
    %173 = arith.addf %168, %172 : vector<16x64xf32>
    %174 = vector.extract_strided_slice %8 {offsets = [0, 18], sizes = [8, 64], strides = [1, 1]} : vector<8x82xbf16> to vector<8x64xbf16>
    %175 = vector.broadcast %2 : vector<1x64xbf16> to vector<8x64xbf16>
    %176 = arith.mulf %174, %175 : vector<8x64xbf16>
    %c26 = arith.constant 26 : index
    %c0_92 = arith.constant 0 : index
    %c0_93 = arith.constant 0 : index
    %177 = vector.load %arg5[%c26, %c0_92, %c0_93] : memref<27x16x8xbf16, #tpu.memory_space<vmem>>, vector<1x16x8xbf16>
    %178 = vector.shape_cast %177 : vector<1x16x8xbf16> to vector<16x8xbf16>
    %cst_94 = arith.constant dense<0.000000e+00> : vector<16x64xf32>
    %179 = tpu.matmul %178, %176, %cst_94 {dimension_numbers = #tpu.dot_dimension_numbers<[1], [0], [0], [1], [0, 0, 1, 1], [], []>} : vector<16x8xbf16>, vector<8x64xbf16>, vector<16x64xf32> -> vector<16x64xf32>
    %180 = arith.addf %173, %179 : vector<16x64xf32>
    %c0_95 = arith.constant 0 : index
    %c0_96 = arith.constant 0 : index
    %181 = vector.load %arg7[%c0_95, %c0_96] : memref<16x1xf32, #tpu.memory_space<vmem>>, vector<16x1xf32>
    %182 = vector.broadcast %181 : vector<16x1xf32> to vector<16x64xf32>
    %183 = arith.addf %180, %182 : vector<16x64xf32>
    %c0_97 = arith.constant 0 : index
    %c0_98 = arith.constant 0 : index
    %c0_99 = arith.constant 0 : index
    %c0_100 = arith.constant 0 : index
    %184 = vector.load %arg8[%c0_97, %c0_98, %c0_99, %c0_100] : memref<1x1x16x64xf32, #tpu.memory_space<vmem>>, vector<1x1x16x64xf32>
    %185 = vector.shape_cast %184 : vector<1x1x16x64xf32> to vector<16x64xf32>
    %186 = vector.shape_cast %183 : vector<16x64xf32> to vector<1x1x16x64xf32>
    tpu.vector_store %arg8[%c0_97, %c0_98, %c0_99, %c0_100], %186 {strides = array<i32>} : memref<1x1x16x64xf32, #tpu.memory_space<vmem>>, vector<1x1x16x64xf32>,
    return
  }
  func.func @transform_0(%arg0: i32, %arg1: i32) -> (i32, i32, i32, i32) {
    %c0_i32 = arith.constant 0 : i32
    %0 = arith.addi %arg1, %c0_i32 : i32
    %c0_i32_0 = arith.constant 0 : i32
    %c0_i32_1 = arith.constant 0 : i32
    %c0_i32_2 = arith.constant 0 : i32
    return %arg0, %0, %c0_i32_0, %c0_i32_1 : i32, i32, i32, i32
  }
  func.func @transform_1(%arg0: i32, %arg1: i32) -> (i32, i32, i32, i32) {
    %c1_i32 = arith.constant 1 : i32
    %0 = arith.addi %arg1, %c1_i32 : i32
    %c0_i32 = arith.constant 0 : i32
    %c0_i32_0 = arith.constant 0 : i32
    %c0_i32_1 = arith.constant 0 : i32
    return %arg0, %0, %c0_i32, %c0_i32_0 : i32, i32, i32, i32
  }
  func.func @transform_2(%arg0: i32, %arg1: i32) -> (i32, i32, i32, i32) {
    %c2_i32 = arith.constant 2 : i32
    %0 = arith.addi %arg1, %c2_i32 : i32
    %c0_i32 = arith.constant 0 : i32
    %c0_i32_0 = arith.constant 0 : i32
    %c0_i32_1 = arith.constant 0 : i32
    return %arg0, %0, %c0_i32, %c0_i32_0 : i32, i32, i32, i32
  }
  func.func @transform_3(%arg0: i32, %arg1: i32) -> (i32, i32, i32) {
    %c0_i32 = arith.constant 0 : i32
    %c0_i32_0 = arith.constant 0 : i32
    %c0_i32_1 = arith.constant 0 : i32
    %c0_i32_2 = arith.constant 0 : i32
    return %c0_i32, %c0_i32_0, %c0_i32_1 : i32, i32, i32
  }
  func.func @transform_4(%arg0: i32, %arg1: i32) -> (i32, i32) {
    %c0_i32 = arith.constant 0 : i32
    %c0_i32_0 = arith.constant 0 : i32
    %c0_i32_1 = arith.constant 0 : i32
    return %c0_i32, %c0_i32_0 : i32, i32
  }
  func.func @transform_5(%arg0: i32, %arg1: i32) -> (i32, i32) {
    %c0_i32 = arith.constant 0 : i32
    %c0_i32_0 = arith.constant 0 : i32
    %c0_i32_1 = arith.constant 0 : i32
    return %c0_i32, %c0_i32_0 : i32, i32
  }
  func.func @transform_6(%arg0: i32, %arg1: i32) -> (i32, i32, i32, i32) {
    %c0_i32 = arith.constant 0 : i32
    %c0_i32_0 = arith.constant 0 : i32
    %c0_i32_1 = arith.constant 0 : i32
    return %arg0, %arg1, %c0_i32, %c0_i32_0 : i32, i32, i32, i32
  }
}

</mosaic_0001>

<bundles_post_ra>
// kernel: _lambda_.1
= control target key start
LH: loop header
LB: loop body
LE: loop exit
PB: predicated region body
PF: predicated region fallthrough
CT: control target
= control target key end

     0   :  { %s2701_s21 = smov 0   ;;  %s2703_s22 = smov 0   ;;  %s3054_s0 = inlined_call_operand.vmem [shape: bf16[1,10,8,82], index: 0, kind: input, shape index: {}, may-alias: {0,1,2}]   ;;  %s3055_s1 = inlined_call_operand.vmem [shape: bf16[1,10,8,82], index: 1, kind: input, shape index: {}, may-alias: {0,1,2}]   ;;  %s3056_s2 = inlined_call_operand.vmem [shape: bf16[1,10,8,82], index: 2, kind: input, shape index: {}, may-alias: {0,1,2}]   ;;  %s3057_s3 = inlined_call_operand.vmem [shape: bf16[27,16,8], index: 3, kind: input, shape index: {}]   ;;  %s3058_s4 = inlined_call_operand.vmem [shape: bf16[2,64], index: 4, kind: input, shape index: {}]   ;;  %s3059_s5 = inlined_call_operand.vmem [shape: f32[16,1], index: 5, kind: input, shape index: {}]   ;;  %s3060_s6 = inlined_call_operand.vmem [shape: f32[1,8,16,64], index: 6, kind: output, shape index: {}]  }
   0x1   :  { %s2705_s23 = smov 0  }
   0x2 LB: > { %s25_s24 = sadd.s32 1, %s2644_s22  ;;  %p2203_p0 = scmp.ge.s32.totalorder %s2648_s23, 1  ;;  %s2648_s23 = sphi %s2705_s23, %s16_s23   ;;  %s2644_s22 = sphi %s2703_s22, %s3063_s22   ;;  %s2640_s21 = sphi %s2701_s21, %s3062_s21  }
   0x3   : > { %p26_p1 = scmp.ge.s32.totalorder %s25_s24, 8  ;;  %p269_p2 = scmp.lt.s32.totalorder %s2648_s23, 9 }
   0x5   : > { %s3065_s24 = smov (%p26_p1, %s25_s24), 0  ;;  %p270_p3 = pnand %p2203_p0, %p269_p2 }
   0x6   : > { %p326_p4 = scmp.lt.s32.totalorder (!%p270_p3), %s2640_s21, 9  ;;  %s2650_s8 = smov (!%p270_p3), 2  }
   0x7   : > { %273 = sbr.rel (%p270_p3) target bundleno = 558 (0x22e), region = 44  ;;  %s2651_s9 = smov (!%p270_p3), 10  }
   0x8   : > { %s2652_s10 = smov (!%p270_p3), 8   ;;  %s2653_s11 = smov (!%p270_p3), 16  }
   0x9   : > { %s2654_s12 = smov (!%p270_p3), 18   ;;  %s2655_s13 = smov (!%p270_p3), 127  }
   0xa   : > { %s332_s16 = sadd.s32 (!%p270_p3), 1, %s2640_s21  ;;  %s2658_s18 = smov (!%p270_p3), 126  }
   0xb   : > { %p335_p5 = scmp.lt.s32.totalorder (!%p270_p3), %s332_s16, 9  ;;  %s342_s26 = sadd.s32 (!%p270_p3), 2, %s2640_s21 }
   0xc   : > { %v362_v0 = vld [vmem:[%s3058_s4] sm:$0x1]  ;;  %v369_v1 = vlaneseq  ;;  %s327_s27 = scalar_select %p326_p4, %s2640_s21, 9  ;;  %v2656_v14 = vmov 0.0   ;;  %vm393_vm0 = vcmask 1043456   ;;  %vm2657_vm1 = vmmov 0  }
   0xd   : > { %v490_v2 = vshrl.u32 %v362_v0, 16  ;;  %v367_v4 = vpack.i.b16 %v362_v0, %v362_v0  ;;  %2392 = vmatprep.subr.bf16.mxu0 %v2656_v14  ;;  %2398 = vmatprep.subr.bf16.mxu1 %v2656_v14  ;;  %v2600_v16 = vld [vmem:[%s3057_s3] sm:$0xff]   ;;  %vm389_vm2 = vcmask 64512   ;;  %s3067_s16 = smov (!%p335_p5, %s332_s16), 9  ;;  %v2599_v33 = vld [vmem:[%s3057_s3 + $0x8] sm:$0xff]   ;;  %p2774_p6 = scmp.lt.s32.totalorder %s342_s26, 9 }
   0xe   : > { %v370_v3 = vshrl.u32 %v369_v1, 7  ;;  %s2204_s28 = sshll.u32 %s327_s27, 2  ;;  %2394 = vmatprep.mubr.msk.bf16.mxu0 %vm2657_vm1, %v2656_v14  ;;  %2400 = vmatprep.mubr.msk.bf16.mxu1 %vm2657_vm1, %v2656_v14  ;;  %s2205_s17 = sshll.u32 %s3067_s16, 2  ;;  %v2057_v59 = vld [vmem:[%s3059_s5] sm:$0xff]  ;;  %v2058_v60 = vld [vmem:[%s3059_s5 + $0x8] sm:$0xff]  ;;  %v2665_v61 = vmov 0  }
   0xf   : > { %v491_v5 = vpack.i.b16 %v490_v2, %v490_v2  ;;  %s331_s7 = scalar_lea.vmem %s3054_s0, %s2204_s28  ;;  %s340_s25 = scalar_lea.vmem %s3055_s1, %s2205_s17  ;;  %2594 = vset.pattern.permute.xlu1 %v2665_v61  ;;  %2595 = vset.pattern.permute.xlu0 %v2665_v61  ;;  %v2601_v1 = vld [vmem:[%s3057_s3 + $0x10] sm:$0xff]   ;;  %v2619_v61 = vld [vmem:[%s3057_s3 + $0xa0] sm:$0xff]   ;;  %vm2071_vm3 = vcmask 523264  }
  0x10   : > { %v371_v6 = vsub.s32 0, %v370_v3  ;;  %v363_v11 = vld [vmem:[%s331_s7] sm:$0xf]  ;;  %s2659_s27 = smov 119   ;;  %s2660_s28 = smov 120  }
  0x11   : > { %v2733_v12 = vcombine.low %v363_v11, %v363_v11  ;;  %v2772_v34 = vld [vmem:[%s340_s25] sm:$0xf]  ;;  %s3069_s26 = smov (!%p2774_p6, %s342_s26), 9  ;;  %p354_p7 = scmp.lt.s32.totalorder %s2640_s21, 7 }
  0x12   : > { %v496_v7 = vrot.slane %v491_v5, %v371_v6  ;;  %v2726_v8 = vrot.slane %v367_v4, %v371_v6  ;;  %v2258_v37 = vcombine.low %v2772_v34, %v2772_v34 }
  0x13   : > { %s3071_s21 = smov (!%p354_p7, %s2640_s21), 7 }
  0x14   : > { %v2216_v9 = vcombine.low %v496_v7, %v496_v7  ;;  %v2222_v10 = vcombine.low %v2726_v8, %v2726_v8  ;;  %v373_v13 = vmul.bf16 %v2726_v8, %v363_v11  ;;  %v2602_v7 = vld [vmem:[%s3057_s3 + $0x18] sm:$0xff]  }
  0x16   : > { %500 = vrot.lane.b32.xlu0 %v2216_v9, %s2650_s8  ;;  %694 = vrot.lane.b32.xlu1 %v2216_v9, %s2651_s9  ;;  %v447_v15 = vsel %vm393_vm0, %v373_v13, 0  ;;  %s2661_s8 = smov 112   ;;  %s2662_s9 = smov 118   ;;  %v2603_v13 = vld [vmem:[%s3057_s3 + $0x20] sm:$0xff]  }
  0x17   : > { %2399 = vmatpush3.bf16.msra.mxu1 %v447_v15 }
  0x18   : > { %2410 = vmatprep.subr.bf16.mxu1 %v2656_v14 }
  0x1a   : > { %569 = vrot.lane.b32.xlu0 %v2222_v10, %s2652_s10  ;;  %760 = vrot.lane.b32.xlu1 %v2222_v10, %s2653_s11  ;;  %s2663_s10 = smov 110   ;;  %s2664_s11 = smov 111  }
  0x1b   : > { %2401 = vmatmul.mubr.msk.bf16.vlgmr.msra.gmra.mxu1 %vm389_vm2, %v2600_v16 }
  0x1c   : > { %2412 = vmatprep.mubr.msk.bf16.mxu1 %vm2657_vm1, %v2656_v14 }
  0x1e   : > { %885 = vrot.lane.b32.xlu0 %v2216_v9, %s2654_s12  ;;  %387 = vrot.lane.b32.xlu1 %v2733_v12, %s2655_s13  ;;  %s2206_s12 = sshll.u32 %s3069_s26, 2 }
  0x1f   : > { %s350_s16 = scalar_lea.vmem %s3056_s2, %s2206_s12 }
  0x20   : > { %v2804_v46 = vld [vmem:[%s350_s16] sm:$0xf] }
  0x21   : > { %v2300_v49 = vcombine.low %v2804_v46, %v2804_v46 }
  0x88   : > { %v501_v17 = vpop.permute.xlu0 %500  ;;  %v2753_v18 = vpop.permute.xlu1 %694 }
  0x89   : > { %v503_v19 = vmul.bf16 %v501_v17, %v363_v11  ;;  %v697_v23 = vmul.bf16 %v2753_v18, %v363_v11  ;;  %v1071_v36 = vmul.bf16 %v501_v17, %v2772_v34  ;;  %v1256_v40 = vmul.bf16 %v2753_v18, %v2772_v34 }
  0x8a   : > { %v1624_v47 = vmul.bf16 %v501_v17, %v2804_v46  ;;  %v1809_v52 = vmul.bf16 %v2753_v18, %v2804_v46  ;;  %v2604_v17 = vld [vmem:[%s3057_s3 + $0x28] sm:$0xff]  }
  0x8b   : > { %v2220_v20 = vcombine.low %v503_v19, %v503_v19  ;;  %v2235_v31 = vcombine.low %v697_v23, %v697_v23  ;;  %v2263_v39 = vcombine.low %v1071_v36, %v1071_v36  ;;  %v2277_v45 = vcombine.low %v1256_v40, %v1256_v40 }
  0x8c   : > { %v570_v21 = vpop.permute.xlu0 %569  ;;  %v2755_v22 = vpop.permute.xlu1 %760  ;;  %v2305_v51 = vcombine.low %v1624_v47, %v1624_v47  ;;  %v2319_v57 = vcombine.low %v1809_v52, %v1809_v52  ;;  %v951_v23 = vmul.bf16 %v2726_v8, %v2772_v34  ;;  %v2615_v52 = vld [vmem:[%s3057_s3 + $0x80] sm:$0xff]  }
  0x8d   : > { %v572_v24 = vmul.bf16 %v570_v21, %v363_v11  ;;  %515 = vrot.lane.b32.xlu0 %v2220_v20, %s2658_s18  ;;  %v763_v25 = vmul.bf16 %v2755_v22, %v363_v11  ;;  %v1134_v38 = vmul.bf16 %v570_v21, %v2772_v34  ;;  %v1319_v41 = vmul.bf16 %v2755_v22, %v2772_v34  ;;  %v2605_v20 = vld [vmem:[%s3057_s3 + $0x30] sm:$0xff]  }
  0x8e   : > { %v1687_v50 = vmul.bf16 %v570_v21, %v2804_v46  ;;  %v1872_v53 = vmul.bf16 %v2755_v22, %v2804_v46 }
  0x8f   : > { %v2226_v26 = vcombine.low %v572_v24, %v572_v24  ;;  %v2240_v30 = vcombine.low %v763_v25, %v763_v25  ;;  %v2268_v42 = vcombine.low %v1134_v38, %v1134_v38  ;;  %v2282_v44 = vcombine.low %v1319_v41, %v1319_v41  ;;  %v2606_v24 = vld [vmem:[%s3057_s3 + $0x38] sm:$0xff]   ;;  %v2611_v38 = vld [vmem:[%s3057_s3 + $0x60] sm:$0xff]   ;;  %v2612_v41 = vld [vmem:[%s3057_s3 + $0x68] sm:$0xff]  }
  0x90   : > { %v886_v27 = vpop.permute.xlu0 %885  ;;  %v388_v28 = vpop.permute.xlu1 %387  ;;  %v2310_v54 = vcombine.low %v1687_v50, %v1687_v50  ;;  %v2324_v56 = vcombine.low %v1872_v53, %v1872_v53  ;;  %v964_v25 = vsel %vm393_vm0, %v951_v23, 0  ;;  %v1504_v50 = vmul.bf16 %v2726_v8, %v2804_v46  ;;  %v2616_v8 = vld [vmem:[%s3057_s3 + $0x88] sm:$0xff]  }
  0x91   : > { %643 = vrot.lane.b32.xlu0 %v2733_v12, %s2659_s27  ;;  %584 = vrot.lane.b32.xlu1 %v2226_v26, %s2660_s28  ;;  %v888_v29 = vmul.bf16 %v886_v27, %v363_v11  ;;  %v395_v32 = vsel %vm393_vm0, %v388_v28, 0  ;;  %v1441_v43 = vmul.bf16 %v886_v27, %v2772_v34  ;;  %v1994_v55 = vmul.bf16 %v886_v27, %v2804_v46  ;;  %v2607_v26 = vld [vmem:[%s3057_s3 + $0x40] sm:$0xff]  }
  0x92   : > { %2393 = vmatpush3.bf16.msra.mxu0 %v395_v32  ;;  %v2609_v32 = vld [vmem:[%s3057_s3 + $0x50] sm:$0xff]   ;;  %v1517_v53 = vsel %vm393_vm0, %v1504_v50, 0 }
  0x93   : > { %2404 = vmatprep.subr.bf16.mxu0 %v2656_v14  ;;  %v2249_v35 = vcombine.low %v888_v29, %v888_v29  ;;  %v2291_v48 = vcombine.low %v1441_v43, %v1441_v43  ;;  %v2333_v58 = vcombine.low %v1994_v55, %v1994_v55  ;;  %v2608_v29 = vld [vmem:[%s3057_s3 + $0x48] sm:$0xff]   ;;  %v2617_v55 = vld [vmem:[%s3057_s3 + $0x90] sm:$0xff]  }
  0x95   : > { %775 = vrot.lane.b32.xlu0 %v2240_v30, %s2661_s8  ;;  %709 = vrot.lane.b32.xlu1 %v2235_v31, %s2662_s9 }
  0x96   : > { %2395 = vmatmul.mubr.msk.bf16.vlgmr.msra.gmra.mxu0 %vm389_vm2, %v2599_v33 }
  0x97   : > { %2406 = vmatprep.mubr.msk.bf16.mxu0 %vm2657_vm1, %v2656_v14 }
  0x99   : > { %900 = vrot.lane.b32.xlu0 %v2249_v35, %s2663_s10  ;;  %834 = vrot.lane.b32.xlu1 %v2733_v12, %s2664_s11  ;;  %v2610_v35 = vld [vmem:[%s3057_s3 + $0x58] sm:$0xff]  }
  0x9d   : > { %1083 = vrot.lane.b32.xlu0 %v2263_v39, %s2658_s18  ;;  %1020 = vrot.lane.b32.xlu1 %v2258_v37, %s2655_s13 }
  0xa1   : > { %1205 = vrot.lane.b32.xlu0 %v2258_v37, %s2659_s27  ;;  %1146 = vrot.lane.b32.xlu1 %v2268_v42, %s2660_s28 }
  0xa5   : > { %1331 = vrot.lane.b32.xlu0 %v2282_v44, %s2661_s8  ;;  %1268 = vrot.lane.b32.xlu1 %v2277_v45, %s2662_s9  ;;  %v2613_v44 = vld [vmem:[%s3057_s3 + $0x70] sm:$0xff]  }
  0xa9   : > { %1453 = vrot.lane.b32.xlu0 %v2291_v48, %s2663_s10  ;;  %1390 = vrot.lane.b32.xlu1 %v2258_v37, %s2664_s11  ;;  %v2614_v48 = vld [vmem:[%s3057_s3 + $0x78] sm:$0xff]  }
  0xad   : > { %1636 = vrot.lane.b32.xlu0 %v2305_v51, %s2658_s18  ;;  %1573 = vrot.lane.b32.xlu1 %v2300_v49, %s2655_s13 }
  0xb1   : > { %1758 = vrot.lane.b32.xlu0 %v2300_v49, %s2659_s27  ;;  %1699 = vrot.lane.b32.xlu1 %v2310_v54, %s2660_s28 }
  0xb5   : > { %1884 = vrot.lane.b32.xlu0 %v2324_v56, %s2661_s8  ;;  %1821 = vrot.lane.b32.xlu1 %v2319_v57, %s2662_s9 }
  0xb9   : > { %2006 = vrot.lane.b32.xlu0 %v2333_v58, %s2663_s10  ;;  %1943 = vrot.lane.b32.xlu1 %v2300_v49, %s2664_s11  ;;  %v2618_v58 = vld [vmem:[%s3057_s3 + $0x98] sm:$0xff]   ;;  %s2337_s10 = sshll.u32 %s3071_s21, 4 }
  0xba   : > { %s360_s14 = scalar_lea.vmem %s3060_s6, %s2337_s10 }
  0xbd   : > { %2061 = vperm.xlu1 %2594, %v2057_v59   ;;  %2066 = vperm.xlu0 %2595, %v2058_v60  }
  0xdb   : > { %v2833_v63 = vpop.f32.mrf.mxu1 }
  0xdd   : > { %v2402_v2 = vpop.f32.mrf.mxu1 }
  0xdf   : > { %v2846_v9 = vpop.f32.mrf.mxu1 }
  0xe1   : > { %v2403_v10 = vpop.f32.mrf.mxu1 }
  0xe2   : > { %v2622_v10 = vld [vmem:[%s3057_s3 + $0xb8] sm:$0xff]  }
  0xff   : > { %v516_v62 = vpop.permute.xlu0 %515 }
 0x100   : > { %v521_v0 = vsel %vm393_vm0, %v516_v62, 0 }
 0x101   : > { %2405 = vmatpush3.bf16.msra.mxu0 %v521_v0 }
 0x102   : > { %2416 = vmatprep.subr.bf16.mxu0 %v2656_v14 }
 0x103   : > { %v644_v3 = vpop.permute.xlu0 %643  ;;  %v585_v4 = vpop.permute.xlu1 %584 }
 0x104   : > { %v649_v5 = vsel %vm393_vm0, %v644_v3, 0  ;;  %v590_v6 = vsel %vm393_vm0, %v585_v4, 0  ;;  %2407 = vmatmul.mubr.msk.bf16.vlgmr.msra.gmra.mxu0 %vm389_vm2, %v2601_v1  ;;  %v2620_v1 = vld [vmem:[%s3057_s3 + $0xa8] sm:$0xff]   ;;  %v2621_v4 = vld [vmem:[%s3057_s3 + $0xb0] sm:$0xff]  }
 0x105   : > { %2411 = vmatpush3.bf16.msra.mxu1 %v590_v6  ;;  %2417 = vmatpush3.bf16.msra.mxu0 %v649_v5 }
 0x106   : > { %2418 = vmatprep.mubr.msk.bf16.mxu0 %vm2657_vm1, %v2656_v14  ;;  %2422 = vmatprep.subr.bf16.mxu1 %v2656_v14 }
 0x107   : > { %v710_v11 = vpop.permute.xlu1 %709  ;;  %2428 = vmatprep.subr.bf16.mxu0 %v2656_v14  ;;  %v776_v15 = vpop.permute.xlu0 %775 }
 0x108   : > { %v715_v12 = vsel %vm393_vm0, %v710_v11, 0  ;;  %2413 = vmatmul.mubr.msk.bf16.vlgmr.msra.gmra.mxu1 %vm389_vm2, %v2602_v7  ;;  %v781_v16 = vsel %vm393_vm0, %v776_v15, 0 }
 0x109   : > { %2423 = vmatpush3.bf16.msra.mxu1 %v715_v12  ;;  %2424 = vmatprep.mubr.msk.bf16.mxu1 %vm2657_vm1, %v2656_v14 }
 0x10a   : > { %2434 = vmatprep.subr.bf16.mxu1 %v2656_v14 }
 0x10b   : > { %v835_v18 = vpop.permute.xlu1 %834  ;;  %v901_v21 = vpop.permute.xlu0 %900 }
 0x10c   : > { %2419 = vmatmul.mubr.msk.bf16.vlgmr.msra.gmra.mxu0 %vm389_vm2, %v2603_v13  ;;  %v840_v19 = vsel %vm393_vm0, %v835_v18, 0  ;;  %v906_v22 = vsel %vm393_vm0, %v901_v21, 0  ;;  %v2623_v13 = vld [vmem:[%s3057_s3 + $0xc0] sm:$0xff]   ;;  %v2625_v21 = vld [vmem:[%s3057_s3 + $0xd0] sm:$0xff]  }
 0x10d   : > { %2429 = vmatpush3.bf16.msra.mxu0 %v781_v16  ;;  %2430 = vmatprep.mubr.msk.bf16.mxu0 %vm2657_vm1, %v2656_v14 }
 0x10e   : > { %2440 = vmatprep.subr.bf16.mxu0 %v2656_v14 }
 0x10f   : > { %v1021_v27 = vpop.permute.xlu1 %1020  ;;  %v1084_v30 = vpop.permute.xlu0 %1083 }
 0x110   : > { %2425 = vmatmul.mubr.msk.bf16.vlgmr.msra.gmra.mxu1 %vm389_vm2, %v2604_v17  ;;  %v1026_v28 = vsel %vm393_vm0, %v1021_v27, 0  ;;  %v1089_v31 = vsel %vm393_vm0, %v1084_v30, 0 }
 0x111   : > { %2435 = vmatpush3.bf16.msra.mxu1 %v840_v19  ;;  %2436 = vmatprep.mubr.msk.bf16.mxu1 %vm2657_vm1, %v2656_v14  ;;  %v2624_v19 = vld [vmem:[%s3057_s3 + $0xc8] sm:$0xff]  }
 0x112   : > { %2446 = vmatprep.subr.bf16.mxu1 %v2656_v14 }
 0x113   : > { %v1147_v33 = vpop.permute.xlu1 %1146  ;;  %v1206_v36 = vpop.permute.xlu0 %1205 }
 0x114   : > { %2431 = vmatmul.mubr.msk.bf16.vlgmr.msra.gmra.mxu0 %vm389_vm2, %v2605_v20  ;;  %v1152_v34 = vsel %vm393_vm0, %v1147_v33, 0  ;;  %v1211_v37 = vsel %vm393_vm0, %v1206_v36, 0 }
 0x115   : > { %2441 = vmatpush3.bf16.msra.mxu0 %v906_v22  ;;  %2442 = vmatprep.mubr.msk.bf16.mxu0 %vm2657_vm1, %v2656_v14 }
 0x116   : > { %2452 = vmatprep.subr.bf16.mxu0 %v2656_v14 }
 0x117   : > { %v1269_v39 = vpop.permute.xlu1 %1268  ;;  %v1332_v42 = vpop.permute.xlu0 %1331 }
 0x118   : > { %2437 = vmatmul.mubr.msk.bf16.vlgmr.msra.gmra.mxu1 %vm389_vm2, %v2606_v24  ;;  %v1274_v40 = vsel %vm393_vm0, %v1269_v39, 0  ;;  %v1337_v43 = vsel %vm393_vm0, %v1332_v42, 0 }
 0x119   : > { %2447 = vmatpush3.bf16.msra.mxu1 %v964_v25  ;;  %2448 = vmatprep.mubr.msk.bf16.mxu1 %vm2657_vm1, %v2656_v14 }
 0x11a   : > { %2458 = vmatprep.subr.bf16.mxu1 %v2656_v14 }
 0x11b   : > { %v1391_v45 = vpop.permute.xlu1 %1390  ;;  %v1454_v49 = vpop.permute.xlu0 %1453 }
 0x11c   : > { %2443 = vmatmul.mubr.msk.bf16.vlgmr.msra.gmra.mxu0 %vm389_vm2, %v2607_v26  ;;  %v1396_v47 = vsel %vm393_vm0, %v1391_v45, 0  ;;  %v1459_v51 = vsel %vm393_vm0, %v1454_v49, 0 }
 0x11d   : > { %2453 = vmatpush3.bf16.msra.mxu0 %v1026_v28  ;;  %2454 = vmatprep.mubr.msk.bf16.mxu0 %vm2657_vm1, %v2656_v14 }
 0x11e   : > { %2464 = vmatprep.subr.bf16.mxu0 %v2656_v14 }
 0x11f   : > { %v1574_v46 = vpop.permute.xlu1 %1573  ;;  %v1637_v56 = vpop.permute.xlu0 %1636 }
 0x120   : > { %2449 = vmatmul.mubr.msk.bf16.vlgmr.msra.gmra.mxu1 %vm389_vm2, %v2608_v29  ;;  %v1579_v54 = vsel %vm393_vm0, %v1574_v46, 0  ;;  %v1642_v57 = vsel %vm393_vm0, %v1637_v56, 0 }
 0x121   : > { %2459 = vmatpush3.bf16.msra.mxu1 %v1089_v31  ;;  %2460 = vmatprep.mubr.msk.bf16.mxu1 %vm2657_vm1, %v2656_v14 }
 0x122   : > { %2470 = vmatprep.subr.bf16.mxu1 %v2656_v14 }
 0x123   : > { %v1700_v59 = vpop.permute.xlu1 %1699  ;;  %v1759_v62 = vpop.permute.xlu0 %1758 }
 0x124   : > { %2455 = vmatmul.mubr.msk.bf16.vlgmr.msra.gmra.mxu0 %vm389_vm2, %v2609_v32  ;;  %v1705_v60 = vsel %vm393_vm0, %v1700_v59, 0  ;;  %v1764_v0 = vsel %vm393_vm0, %v1759_v62, 0 }
 0x125   : > { %2465 = vmatpush3.bf16.msra.mxu0 %v1152_v34  ;;  %2466 = vmatprep.mubr.msk.bf16.mxu0 %vm2657_vm1, %v2656_v14 }
 0x126   : > { %2476 = vmatprep.subr.bf16.mxu0 %v2656_v14 }
 0x127   : > { %v1822_v2 = vpop.permute.xlu1 %1821  ;;  %v1885_v5 = vpop.permute.xlu0 %1884 }
 0x128   : > { %2461 = vmatmul.mubr.msk.bf16.vlgmr.msra.gmra.mxu1 %vm389_vm2, %v2610_v35  ;;  %v1827_v3 = vsel %vm393_vm0, %v1822_v2, 0  ;;  %v1890_v7 = vsel %vm393_vm0, %v1885_v5, 0 }
 0x129   : > { %2471 = vmatpush3.bf16.msra.mxu1 %v1211_v37  ;;  %2472 = vmatprep.mubr.msk.bf16.mxu1 %vm2657_vm1, %v2656_v14 }
 0x12a   : > { %2482 = vmatprep.subr.bf16.mxu1 %v2656_v14 }
 0x12b   : > { %v1944_v6 = vpop.permute.xlu1 %1943  ;;  %v2007_v16 = vpop.permute.xlu0 %2006 }
 0x12c   : > { %2467 = vmatmul.mubr.msk.bf16.vlgmr.msra.gmra.mxu0 %vm389_vm2, %v2611_v38  ;;  %v1949_v11 = vsel %vm393_vm0, %v1944_v6, 0  ;;  %v2012_v18 = vsel %vm393_vm0, %v2007_v16, 0 }
 0x12d   : > { %2477 = vmatpush3.bf16.msra.mxu0 %v1274_v40  ;;  %2478 = vmatprep.mubr.msk.bf16.mxu0 %vm2657_vm1, %v2656_v14 }
 0x12e   : > { %2488 = vmatprep.subr.bf16.mxu0 %v2656_v14 }
 0x130   : > { %2473 = vmatmul.mubr.msk.bf16.vlgmr.msra.gmra.mxu1 %vm389_vm2, %v2612_v41 }
 0x131   : > { %2483 = vmatpush3.bf16.msra.mxu1 %v1337_v43  ;;  %2484 = vmatprep.mubr.msk.bf16.mxu1 %vm2657_vm1, %v2656_v14 }
 0x132   : > { %2494 = vmatprep.subr.bf16.mxu1 %v2656_v14 }
 0x134   : > { %2479 = vmatmul.mubr.msk.bf16.vlgmr.msra.gmra.mxu0 %vm389_vm2, %v2613_v44 }
 0x135   : > { %2489 = vmatpush3.bf16.msra.mxu0 %v1396_v47  ;;  %2490 = vmatprep.mubr.msk.bf16.mxu0 %vm2657_vm1, %v2656_v14 }
 0x136   : > { %2500 = vmatprep.subr.bf16.mxu0 %v2656_v14 }
 0x138   : > { %2485 = vmatmul.mubr.msk.bf16.vlgmr.msra.gmra.mxu1 %vm389_vm2, %v2614_v48 }
 0x139   : > { %2495 = vmatpush3.bf16.msra.mxu1 %v1459_v51  ;;  %2496 = vmatprep.mubr.msk.bf16.mxu1 %vm2657_vm1, %v2656_v14 }
 0x13a   : > { %2506 = vmatprep.subr.bf16.mxu1 %v2656_v14 }
 0x13c   : > { %2491 = vmatmul.mubr.msk.bf16.vlgmr.msra.gmra.mxu0 %vm389_vm2, %v2615_v52 }
 0x13d   : > { %2501 = vmatpush3.bf16.msra.mxu0 %v1517_v53  ;;  %2502 = vmatprep.mubr.msk.bf16.mxu0 %vm2657_vm1, %v2656_v14 }
 0x13e   : > { %2512 = vmatprep.subr.bf16.mxu0 %v2656_v14 }
 0x140   : > { %2497 = vmatmul.mubr.msk.bf16.vlgmr.msra.gmra.mxu1 %vm389_vm2, %v2616_v8 }
 0x141   : > { %2507 = vmatpush3.bf16.msra.mxu1 %v1579_v54  ;;  %2508 = vmatprep.mubr.msk.bf16.mxu1 %vm2657_vm1, %v2656_v14 }
 0x142   : > { %2518 = vmatprep.subr.bf16.mxu1 %v2656_v14 }
 0x144   : > { %2503 = vmatmul.mubr.msk.bf16.vlgmr.msra.gmra.mxu0 %vm389_vm2, %v2617_v55 }
 0x145   : > { %2513 = vmatpush3.bf16.msra.mxu0 %v1642_v57  ;;  %2514 = vmatprep.mubr.msk.bf16.mxu0 %vm2657_vm1, %v2656_v14 }
 0x146   : > { %2524 = vmatprep.subr.bf16.mxu0 %v2656_v14 }
 0x148   : > { %2509 = vmatmul.mubr.msk.bf16.vlgmr.msra.gmra.mxu1 %vm389_vm2, %v2618_v58 }
 0x149   : > { %2519 = vmatpush3.bf16.msra.mxu1 %v1705_v60  ;;  %2520 = vmatprep.mubr.msk.bf16.mxu1 %vm2657_vm1, %v2656_v14 }
 0x14a   : > { %2530 = vmatprep.subr.bf16.mxu1 %v2656_v14 }
 0x14c   : > { %2515 = vmatmul.mubr.msk.bf16.vlgmr.msra.gmra.mxu0 %vm389_vm2, %v2619_v61 }
 0x14d   : > { %2525 = vmatpush3.bf16.msra.mxu0 %v1764_v0  ;;  %2526 = vmatprep.mubr.msk.bf16.mxu0 %vm2657_vm1, %v2656_v14 }
 0x14e   : > { %2536 = vmatprep.subr.bf16.mxu0 %v2656_v14 }
 0x150   : > { %2521 = vmatmul.mubr.msk.bf16.vlgmr.msra.gmra.mxu1 %vm389_vm2, %v2620_v1 }
 0x151   : > { %2531 = vmatpush3.bf16.msra.mxu1 %v1827_v3  ;;  %2532 = vmatprep.mubr.msk.bf16.mxu1 %vm2657_vm1, %v2656_v14 }
 0x152   : > { %2542 = vmatprep.subr.bf16.mxu1 %v2656_v14 }
 0x154   : > { %2527 = vmatmul.mubr.msk.bf16.vlgmr.msra.gmra.mxu0 %vm389_vm2, %v2621_v4 }
 0x155   : > { %2537 = vmatpush3.bf16.msra.mxu0 %v1890_v7  ;;  %2538 = vmatprep.mubr.msk.bf16.mxu0 %vm2657_vm1, %v2656_v14 }
 0x156   : > { %2548 = vmatprep.subr.bf16.mxu0 %v2656_v14  ;;  %v3017_v12 = vpop.f32.mrf.mxu0 }
 0x157   : > { %v484_v3 = vadd.f32 %v2833_v63, %v3017_v12 }
 0x158   : > { %2533 = vmatmul.mubr.msk.bf16.vlgmr.msra.gmra.mxu1 %vm389_vm2, %v2622_v10  ;;  %v2396_v15 = vpop.f32.mrf.mxu0 }
 0x159   : > { %2543 = vmatpush3.bf16.msra.mxu1 %v1949_v11  ;;  %2544 = vmatprep.mubr.msk.bf16.mxu1 %vm2657_vm1, %v2656_v14 }
 0x15a   : > { %v434_v17 = vpop.f32.mrf.mxu0 }
 0x15b   : > { %v487_v11 = vadd.f32 %v2846_v9, %v434_v17 }
 0x15c   : > { %2539 = vmatmul.mubr.msk.bf16.vlgmr.msra.gmra.mxu0 %vm389_vm2, %v2623_v13  ;;  %v2397_v20 = vpop.f32.mrf.mxu0 }
 0x15d   : > { %2549 = vmatpush3.bf16.msra.mxu0 %v2012_v18  ;;  %2550 = vmatprep.mubr.msk.bf16.mxu0 %vm2657_vm1, %v2656_v14 }
 0x160   : > { %2545 = vmatmul.mubr.msk.bf16.vlgmr.msra.gmra.mxu1 %vm389_vm2, %v2624_v19 }
 0x164   : > { %2551 = vmatmul.mubr.msk.bf16.vlgmr.msra.gmra.mxu0 %vm389_vm2, %v2625_v21 }
 0x1c4   : > { %v557_v22 = vpop.f32.mrf.mxu0 }
 0x1c5   : > { %v564_v6 = vadd.f32 %v557_v22, %v484_v3 }
 0x1c6   : > { %v2408_v23 = vpop.f32.mrf.mxu0 }
 0x1c8   : > { %v560_v24 = vpop.f32.mrf.mxu0  ;;  %v626_v25 = vpop.f32.mrf.mxu1 }
 0x1c9   : > { %v633_v13 = vadd.f32 %v626_v25, %v564_v6  ;;  %v565_v18 = vadd.f32 %v560_v24, %v487_v11 }
 0x1ca   : > { %v2409_v26 = vpop.f32.mrf.mxu0  ;;  %v2414_v27 = vpop.f32.mrf.mxu1 }
 0x1cc   : > { %v629_v28 = vpop.f32.mrf.mxu1  ;;  %v685_v29 = vpop.f32.mrf.mxu0 }
 0x1cd   : > { %v692_v19 = vadd.f32 %v685_v29, %v633_v13  ;;  %v634_v23 = vadd.f32 %v629_v28, %v565_v18 }
 0x1ce   : > { %v2415_v30 = vpop.f32.mrf.mxu1  ;;  %v2420_v31 = vpop.f32.mrf.mxu0 }
 0x1d0   : > { %v688_v32 = vpop.f32.mrf.mxu0  ;;  %v751_v14 = vpop.f32.mrf.mxu1 }
 0x1d1   : > { %v758_v26 = vadd.f32 %v751_v14, %v692_v19  ;;  %v693_v31 = vadd.f32 %v688_v32, %v634_v23 }
 0x1d2   : > { %v2421_v33 = vpop.f32.mrf.mxu0  ;;  %v2426_v34 = vpop.f32.mrf.mxu1 }
 0x1d4   : > { %v754_v35 = vpop.f32.mrf.mxu1  ;;  %v817_v36 = vpop.f32.mrf.mxu0 }
 0x1d5   : > { %v824_v63 = vadd.f32 %v817_v36, %v758_v26  ;;  %v759_v22 = vadd.f32 %v754_v35, %v693_v31 }
 0x1d6   : > { %v2427_v37 = vpop.f32.mrf.mxu1  ;;  %v2432_v38 = vpop.f32.mrf.mxu0 }
 0x1d8   : > { %v820_v39 = vpop.f32.mrf.mxu0  ;;  %v876_v40 = vpop.f32.mrf.mxu1 }
 0x1d9   : > { %v883_v34 = vadd.f32 %v876_v40, %v824_v63  ;;  %v825_v9 = vadd.f32 %v820_v39, %v759_v22 }
 0x1da   : > { %v2433_v41 = vpop.f32.mrf.mxu0  ;;  %v2438_v42 = vpop.f32.mrf.mxu1 }
 0x1dc   : > { %v879_v43 = vpop.f32.mrf.mxu1  ;;  %v942_v44 = vpop.f32.mrf.mxu0 }
 0x1dd   : > { %v949_v17 = vadd.f32 %v942_v44, %v883_v34  ;;  %v884_v24 = vadd.f32 %v879_v43, %v825_v9 }
 0x1de   : > { %v2439_v45 = vpop.f32.mrf.mxu1  ;;  %v2444_v47 = vpop.f32.mrf.mxu0 }
 0x1e0   : > { %v945_v48 = vpop.f32.mrf.mxu0  ;;  %v1000_v49 = vpop.f32.mrf.mxu1 }
 0x1e1   : > { %v1007_v29 = vadd.f32 %v1000_v49, %v949_v17  ;;  %v950_v28 = vadd.f32 %v945_v48, %v884_v24 }
 0x1e2   : > { %v2445_v50 = vpop.f32.mrf.mxu0  ;;  %v2450_v51 = vpop.f32.mrf.mxu1 }
 0x1e4   : > { %v1003_v52 = vpop.f32.mrf.mxu1  ;;  %v1062_v53 = vpop.f32.mrf.mxu0 }
 0x1e5   : > { %v1069_v14 = vadd.f32 %v1062_v53, %v1007_v29  ;;  %v1008_v32 = vadd.f32 %v1003_v52, %v950_v28 }
 0x1e6   : > { %v2451_v8 = vpop.f32.mrf.mxu1  ;;  %v2456_v46 = vpop.f32.mrf.mxu0 }
 0x1e8   : > { %v1065_v54 = vpop.f32.mrf.mxu0  ;;  %v1125_v55 = vpop.f32.mrf.mxu1 }
 0x1e9   : > { %v1132_v36 = vadd.f32 %v1125_v55, %v1069_v14  ;;  %v1070_v35 = vadd.f32 %v1065_v54, %v1008_v32 }
 0x1ea   : > { %v2457_v56 = vpop.f32.mrf.mxu0  ;;  %v2462_v57 = vpop.f32.mrf.mxu1 }
 0x1ec   : > { %v1128_v58 = vpop.f32.mrf.mxu1  ;;  %v1188_v59 = vpop.f32.mrf.mxu0 }
 0x1ed   : > { %v1195_v40 = vadd.f32 %v1188_v59, %v1132_v36  ;;  %v1133_v39 = vadd.f32 %v1128_v58, %v1070_v35  ;;  %v2067_v35 = vpop.permute.xlu0 %2066 }
 0x1ee   : > { %v2463_v60 = vpop.f32.mrf.mxu1  ;;  %v2468_v61 = vpop.f32.mrf.mxu0 }
 0x1f0   : > { %v1191_v62 = vpop.f32.mrf.mxu0  ;;  %v1247_v0 = vpop.f32.mrf.mxu1 }
 0x1f1   : > { %v1254_v44 = vadd.f32 %v1247_v0, %v1195_v40  ;;  %v1196_v43 = vadd.f32 %v1191_v62, %v1133_v39 }
 0x1f2   : > { %v2469_v1 = vpop.f32.mrf.mxu0  ;;  %v2474_v2 = vpop.f32.mrf.mxu1 }
 0x1f4   : > { %v1250_v4 = vpop.f32.mrf.mxu1  ;;  %v1310_v5 = vpop.f32.mrf.mxu0 }
 0x1f5   : > { %v1317_v49 = vadd.f32 %v1310_v5, %v1254_v44  ;;  %v1255_v48 = vadd.f32 %v1250_v4, %v1196_v43 }
 0x1f6   : > { %v2475_v7 = vpop.f32.mrf.mxu1  ;;  %v2480_v10 = vpop.f32.mrf.mxu0 }
 0x1f8   : > { %v1313_v15 = vpop.f32.mrf.mxu0  ;;  %v1373_v16 = vpop.f32.mrf.mxu1 }
 0x1f9   : > { %v1380_v53 = vadd.f32 %v1373_v16, %v1317_v49  ;;  %v1318_v52 = vadd.f32 %v1313_v15, %v1255_v48 }
 0x1fa   : > { %v2481_v20 = vpop.f32.mrf.mxu0  ;;  %v2486_v21 = vpop.f32.mrf.mxu1 }
 0x1fc   : > { %v1376_v27 = vpop.f32.mrf.mxu1  ;;  %v1432_v30 = vpop.f32.mrf.mxu0 }
 0x1fd   : > { %v1439_v55 = vadd.f32 %v1432_v30, %v1380_v53  ;;  %v1381_v54 = vadd.f32 %v1376_v27, %v1318_v52 }
 0x1fe   : > { %v2487_v12 = vpop.f32.mrf.mxu1  ;;  %v2492_v33 = vpop.f32.mrf.mxu0 }
 0x200   : > { %v1435_v37 = vpop.f32.mrf.mxu0  ;;  %v1495_v38 = vpop.f32.mrf.mxu1 }
 0x201   : > { %v1502_v59 = vadd.f32 %v1495_v38, %v1439_v55  ;;  %v1440_v0 = vadd.f32 %v1435_v37, %v1381_v54 }
 0x202   : > { %v2493_v25 = vpop.f32.mrf.mxu0  ;;  %v2498_v41 = vpop.f32.mrf.mxu1 }
 0x204   : > { %v1498_v42 = vpop.f32.mrf.mxu1  ;;  %v1553_v45 = vpop.f32.mrf.mxu0 }
 0x205   : > { %v1560_v11 = vadd.f32 %v1553_v45, %v1502_v59  ;;  %v1503_v5 = vadd.f32 %v1498_v42, %v1440_v0  ;;  %v2062_v42 = vpop.permute.xlu1 %2061 }
 0x206   : > { %v2499_v47 = vpop.f32.mrf.mxu1  ;;  %v2504_v50 = vpop.f32.mrf.mxu0 }
 0x208   : > { %v1556_v51 = vpop.f32.mrf.mxu0  ;;  %v1615_v8 = vpop.f32.mrf.mxu1 }
 0x209   : > { %v1622_v18 = vadd.f32 %v1615_v8, %v1560_v11  ;;  %v1561_v16 = vadd.f32 %v1556_v51, %v1503_v5 }
 0x20a   : > { %v2505_v46 = vpop.f32.mrf.mxu0  ;;  %v2510_v56 = vpop.f32.mrf.mxu1 }
 0x20c   : > { %v1618_v57 = vpop.f32.mrf.mxu1  ;;  %v1678_v60 = vpop.f32.mrf.mxu0 }
 0x20d   : > { %v1685_v20 = vadd.f32 %v1678_v60, %v1622_v18  ;;  %v1623_v23 = vadd.f32 %v1618_v57, %v1561_v16 }
 0x20e   : > { %v2511_v61 = vpop.f32.mrf.mxu1  ;;  %v2516_v1 = vpop.f32.mrf.mxu0 }
 0x210   : > { %v1681_v2 = vpop.f32.mrf.mxu0  ;;  %v1741_v3 = vpop.f32.mrf.mxu1 }
 0x211   : > { %v1748_v26 = vadd.f32 %v1741_v3, %v1685_v20  ;;  %v1686_v31 = vadd.f32 %v1681_v2, %v1623_v23 }
 0x212   : > { %v2517_v6 = vpop.f32.mrf.mxu0  ;;  %v2522_v7 = vpop.f32.mrf.mxu1 }
 0x214   : > { %v1744_v10 = vpop.f32.mrf.mxu1  ;;  %v1800_v58 = vpop.f32.mrf.mxu0 }
 0x215   : > { %v1807_v63 = vadd.f32 %v1800_v58, %v1748_v26  ;;  %v1749_v22 = vadd.f32 %v1744_v10, %v1686_v31 }
 0x216   : > { %v2523_v13 = vpop.f32.mrf.mxu1  ;;  %v2528_v62 = vpop.f32.mrf.mxu0 }
 0x218   : > { %v1803_v19 = vpop.f32.mrf.mxu0  ;;  %v1863_v4 = vpop.f32.mrf.mxu1 }
 0x219   : > { %v1870_v34 = vadd.f32 %v1863_v4, %v1807_v63  ;;  %v1808_v9 = vadd.f32 %v1803_v19, %v1749_v22 }
 0x21a   : > { %v2529_v15 = vpop.f32.mrf.mxu0  ;;  %v2534_v21 = vpop.f32.mrf.mxu1 }
 0x21c   : > { %v1866_v27 = vpop.f32.mrf.mxu1  ;;  %v1926_v30 = vpop.f32.mrf.mxu0 }
 0x21d   : > { %v1933_v17 = vadd.f32 %v1926_v30, %v1870_v34  ;;  %v1871_v24 = vadd.f32 %v1866_v27, %v1808_v9 }
 0x21e   : > { %v2535_v12 = vpop.f32.mrf.mxu1  ;;  %v2540_v33 = vpop.f32.mrf.mxu0 }
 0x220   : > { %v1929_v37 = vpop.f32.mrf.mxu0  ;;  %v1985_v38 = vpop.f32.mrf.mxu1 }
 0x221   : > { %v1992_v29 = vadd.f32 %v1985_v38, %v1933_v17  ;;  %v1934_v14 = vadd.f32 %v1929_v37, %v1871_v24 }
 0x222   : > { %v2541_v25 = vpop.f32.mrf.mxu0  ;;  %v2546_v41 = vpop.f32.mrf.mxu1 }
 0x224   : > { %v1988_v45 = vpop.f32.mrf.mxu1  ;;  %v2048_v28 = vpop.f32.mrf.mxu0 }
 0x225   : > { %v2055_v47 = vadd.f32 %v2048_v28, %v1992_v29  ;;  %v1993_v36 = vadd.f32 %v1988_v45, %v1934_v14 }
 0x226   : > { %v2552_v50 = vpop.f32.mrf.mxu0  ;;  %v2547_v32 = vpop.f32.mrf.mxu1 }
 0x227   : > { %v2069_v51 = vadd.f32 %v2062_v42, %v2055_v47 }
 0x228   : > { %v2051_v8 = vpop.f32.mrf.mxu0 }
 0x229   : > { %2072 = vst.msk [vmem:[%s360_s14] sm:$0xff] %vm2071_vm3, %v2069_v51  ;;  %v2056_v40 = vadd.f32 %v2051_v8, %v1993_v36 }
 0x22a   : > { %v2553_v46 = vpop.f32.mrf.mxu0 }
 0x22b   : > { %v2070_v56 = vadd.f32 %v2067_v35, %v2056_v40 }
 0x22d   : > { %2073 = vst.msk [vmem:[%s360_s14 + $0x8] sm:$0xff] %vm2071_vm3, %v2070_v56 }
 0x22e PF: > { %s16_s23 = sadd.s32 1, %s2648_s23   ;;  %s3062_s21 = smov %s2644_s22 }
 0x22f   : > { %p13_p8 = scmp.ge.s32.totalorder %s16_s23, 10   ;;  %s3063_s22 = smov %s3065_s24 }
 0x231   :  { %15 = sbr.rel (!%p13_p8) target bundleno = 2 (0x2), region = 106 }

</bundles_post_ra>
